<compile_context>
chip_gen: v7x
topology: tpu7x:2x2x1
jax: 0.10.0
libtpu: 0.0.40
codegen_flags: <defaults>
</compile_context>

<pallas_src>
import functools
import math

import jax
import jax.numpy as jnp
from jax.experimental import pallas as pl
from jax.experimental.pallas import tpu as pltpu


# -----------------------------------------------------------------------------
# Pallas kernel: whole CustomBlock forward on a (tile_rows, Cp) tile.
# -----------------------------------------------------------------------------
def custom_block_kernel(x_ref, vec_ref, bf_ref, wf_ref, wc_ref, w2_ref,
                        o_ref, *, W):
    rows = x_ref.shape[0]
    x = x_ref[...]                                   # (rows, Cp) f32

    vec = vec_ref[...]                               # (8, Cp) f32
    k1l, k1c, k1r = vec[0:1], vec[1:2], vec[2:3]     # dw_conv1 taps (w-1, w, w+1)
    k2l, k2c, k2r = vec[3:4], vec[4:5], vec[5:6]     # dw_conv2 taps
    bc, b2 = vec[6:7], vec[7:8]                      # folded biases (C-wide)
    bf = bf_ref[...]                                 # (1, C4p) folded bias

    # W-line boundary masks.  Tiles always start at a multiple of W, so the
    # local row index modulo W equals the global w coordinate.
    w_pos = jax.lax.broadcasted_iota(jnp.int32, x.shape, 0) % W
    not_first = w_pos != 0
    not_last = w_pos != (W - 1)

    def dw13(v, kl, kc, kr):
        # Depthwise (1,3) conv along W with zero padding on both sides
        # (PyTorch padding=(0,1)).  Shifts are XLU sublane rolls; the wrapped
        # rows (w==0 for the left tap, w==W-1 for the right tap) are zeroed.
        left = jnp.where(not_first, pltpu.roll(v, shift=1, axis=0), 0.0)
        right = jnp.where(not_last, pltpu.roll(v, shift=rows - 1, axis=0), 0.0)
        return kl * left + kc * v + kr * right

    def mm(a, w_ref_):
        # bf16 operands on the MXU, f32 accumulation.
        return jnp.dot(a.astype(jnp.bfloat16), w_ref_[...],
                       preferred_element_type=jnp.float32)

    # dw_conv1 (dw 1x3) -> [pw1 + BN1 + conv1/conv2 dw-affines + pw, all
    # folded into Wf/bf] -> ReLU6.
    h = jnp.clip(mm(dw13(x, k1l, k1c, k1r), wf_ref) + bf, 0.0, 6.0)
    # conv_combined: 1x1 dw scale/bias + pointwise 4C->C + BN, all folded.
    g = mm(h, wc_ref) + bc
    # dw_conv2: depthwise(1,3) -> pointwise -> BN (folded into W2/b2).
    o_ref[...] = (mm(dw13(g, k2l, k2c, k2r), w2_ref) + b2).astype(o_ref.dtype)


# -----------------------------------------------------------------------------
# Parameter init (deterministic, synthetic) matching the PyTorch module.
# -----------------------------------------------------------------------------
def init_params(channels, key):
    C = channels
    keys = jax.random.split(key, 40)
    it = iter(keys)

    def nrm(shape, scale=0.5):
        return jax.random.normal(next(it), shape, jnp.float32) * scale

    def fold_bn(c):
        eps = 1e-5
        gamma = 1.0 + nrm((c,), 0.1)
        beta = nrm((c,), 0.1)
        mean = nrm((c,), 0.1)
        var = 1.0 + jnp.abs(nrm((c,), 0.1))
        scale = gamma / jnp.sqrt(var + eps)
        shift = beta - mean * scale
        return scale, shift

    P = {}
    P["dw1_w"] = nrm((3, C))                       # (1,3) depthwise taps / chan
    P["dw1_b"] = nrm((C,))
    P["pw1_w"] = nrm((C, C))                       # stored (Cin, Cout)
    P["pw1_b"] = nrm((C,))
    P["bn1_scale"], P["bn1_shift"] = fold_bn(C)
    P["c1_dw_s"] = nrm((C,))
    P["c1_dw_b"] = nrm((C,))
    P["c1_pw_w"] = nrm((C, 4 * C))
    P["c1_pw_b"] = nrm((4 * C,))
    P["c2_dw_s"] = nrm((C,))
    P["c2_dw_b"] = nrm((C,))
    P["c2_pw_w"] = nrm((C, 4 * C))
    P["c2_pw_b"] = nrm((4 * C,))
    P["cc_dw_s"] = nrm((4 * C,))
    P["cc_dw_b"] = nrm((4 * C,))
    P["cc_pw_w"] = nrm((4 * C, C))
    P["cc_pw_b"] = nrm((C,))
    P["bncc_scale"], P["bncc_shift"] = fold_bn(C)
    P["dw2_w"] = nrm((3, C))
    P["dw2_b"] = nrm((C,))
    P["pw2_w"] = nrm((C, C))
    P["pw2_b"] = nrm((C,))
    P["bn2_scale"], P["bn2_shift"] = fold_bn(C)
    return P


# -----------------------------------------------------------------------------
# Constant-fold all affines into the pointwise weights, pad lanes, pack.
# -----------------------------------------------------------------------------
def fold_and_pack_params(P, C, Cp, C4p):
    def pad_mat(a, r, c):
        return jnp.pad(a, ((0, r - a.shape[0]), (0, c - a.shape[1])))

    def pad_vec(a, n):
        return jnp.pad(a, (0, n - a.shape[0]))

    # dw_conv1: dot(u + dw_b, Wpw) + b_pw, then BN  ->  dot(u, W1) + b1
    W1 = P["pw1_w"] * P["bn1_scale"][None, :]
    b1 = (P["dw1_b"] @ P["pw1_w"] + P["pw1_b"]) * P["bn1_scale"] + P["bn1_shift"]

    # conv1/conv2: (y*s + b) @ Wpw + b_pw  ->  y @ (s[:,None]*Wpw) + (b@Wpw + b_pw)
    # and x1 + x2 collapses into one C->4C matmul.
    Wa = P["c1_dw_s"][:, None] * P["c1_pw_w"]
    ba = P["c1_dw_b"] @ P["c1_pw_w"] + P["c1_pw_b"]
    Wb = P["c2_dw_s"][:, None] * P["c2_pw_w"]
    bb = P["c2_dw_b"] @ P["c2_pw_w"] + P["c2_pw_b"]
    Wab, bab = Wa + Wb, ba + bb

    # y is only consumed by conv1/conv2, so fold dw_conv1's pointwise+BN into
    # the fused C->4C matmul (one fewer MXU pass in the kernel):
    #   u @ W1 @ Wab + (b1 @ Wab + bab)
    Wf = W1 @ Wab
    bf = b1 @ Wab + bab

    # conv_combined: dw 1x1 scale/bias + pointwise 4C->C + BN, folded.
    Wc = (P["cc_dw_s"][:, None] * P["cc_pw_w"]) * P["bncc_scale"][None, :]
    bc = (P["cc_dw_b"] @ P["cc_pw_w"] + P["cc_pw_b"]) * P["bncc_scale"] + P["bncc_shift"]

    # dw_conv2: pointwise + BN folded (dw bias folded into b2).
    W2 = P["pw2_w"] * P["bn2_scale"][None, :]
    b2 = (P["dw2_b"] @ P["pw2_w"] + P["pw2_b"]) * P["bn2_scale"] + P["bn2_shift"]

    vec = jnp.stack([
        pad_vec(P["dw1_w"][0], Cp), pad_vec(P["dw1_w"][1], Cp), pad_vec(P["dw1_w"][2], Cp),
        pad_vec(P["dw2_w"][0], Cp), pad_vec(P["dw2_w"][1], Cp), pad_vec(P["dw2_w"][2], Cp),
        pad_vec(bc, Cp), pad_vec(b2, Cp),
    ], axis=0).astype(jnp.float32)                               # (8, Cp)

    return {
        "vec": vec,
        "bf": pad_vec(bf, C4p).reshape(1, C4p).astype(jnp.float32),
        "Wf": pad_mat(Wf, Cp, C4p).astype(jnp.bfloat16),
        "Wc": pad_mat(Wc, C4p, Cp).astype(jnp.bfloat16),
        "W2": pad_mat(W2, Cp, Cp).astype(jnp.bfloat16),
    }


# -----------------------------------------------------------------------------
# Tiling helpers.
# -----------------------------------------------------------------------------
def _round_up(x, m):
    return ((x + m - 1) // m) * m


def _choose_tile_rows(rows_total, W, Cp, C4p, budget_bytes=12 * 1024 * 1024):
    # Tiles must hold whole W-lines and be sublane (8) aligned.
    step = (W * 8) // math.gcd(W, 8)
    # Rough live bytes/row: double-buffered f32 in+out tiles (16*Cp), the f32
    # hidden tensor + its bf16 matmul copy (6*C4p), f32 temporaries for the two
    # depthwise passes plus bf16 matmul copies (~16*Cp).
    per_row = 32 * Cp + 8 * C4p
    t = max(step, (budget_bytes // per_row) // step * step)
    t = min(t, _round_up(rows_total, step))          # never pad past one tile
    if t >= rows_total and rows_total >= 2 * step:
        # Keep >= 2 grid steps so both v7x TensorCores get work.
        t = _round_up((rows_total + 1) // 2, step)
    return t


# -----------------------------------------------------------------------------
# Wrapper: NCHW <-> (rows, Cp) glue + pallas_call.
# -----------------------------------------------------------------------------
def custom_block_pallas(x_nchw, P):
    N, C, H, W = x_nchw.shape
    Cp = _round_up(C, 128)                 # lane-dense channel dim
    C4p = _round_up(4 * C, 128)            # lane-dense hidden dim (not 4*Cp)
    f = fold_and_pack_params(P, C, Cp, C4p)

    # NCHW -> (N*H*W, C): channels on lanes, rows grouped into whole W-lines.
    rows = N * H * W
    xr = jnp.transpose(x_nchw, (0, 2, 3, 1)).reshape(rows, C).astype(jnp.float32)
    xr = jnp.pad(xr, ((0, 0), (0, Cp - C)))

    tile_rows = _choose_tile_rows(rows, W, Cp, C4p)
    rows_pad = _round_up(rows, tile_rows)
    if rows_pad != rows:
        xr = jnp.pad(xr, ((0, rows_pad - rows), (0, 0)))
    grid = (rows_pad // tile_rows,)

    def weight_spec(shape):
        # Constant index map: DMA'd once, stays VMEM-resident across the grid.
        return pl.BlockSpec(shape, lambda i: (0, 0))

    out = pl.pallas_call(
        functools.partial(custom_block_kernel, W=W),
        out_shape=jax.ShapeDtypeStruct((rows_pad, Cp), jnp.float32),
        grid=grid,
        in_specs=[
            pl.BlockSpec((tile_rows, Cp), lambda i: (i, 0)),
            weight_spec(f["vec"].shape),
            weight_spec(f["bf"].shape),
            weight_spec((Cp, C4p)),
            weight_spec((C4p, Cp)),
            weight_spec((Cp, Cp)),
        ],
        out_specs=pl.BlockSpec((tile_rows, Cp), lambda i: (i, 0)),
        compiler_params=pltpu.CompilerParams(
            dimension_semantics=("parallel",),
            vmem_limit_bytes=32 * 1024 * 1024,
        ),
    )(xr, f["vec"], f["bf"], f["Wf"], f["Wc"], f["W2"])

    out = out[:rows, :C].reshape(N, H, W, C)
    return jnp.transpose(out, (0, 3, 1, 2))


# -----------------------------------------------------------------------------
# Pure-JAX reference (unfolded f32 math) for correctness checking.
# -----------------------------------------------------------------------------
def custom_block_ref(x_nchw, P):
    N, C, H, W = x_nchw.shape
    v = jnp.transpose(x_nchw, (0, 2, 3, 1)).reshape(N * H, W, C).astype(jnp.float32)

    def dw13_full(t, taps, b):
        tp = jnp.pad(t, ((0, 0), (1, 1), (0, 0)))
        return taps[0] * tp[:, :-2] + taps[1] * tp[:, 1:-1] + taps[2] * tp[:, 2:] + b

    y = dw13_full(v, P["dw1_w"], P["dw1_b"])
    y = y @ P["pw1_w"] + P["pw1_b"]
    y = y * P["bn1_scale"] + P["bn1_shift"]
    x1 = (y * P["c1_dw_s"] + P["c1_dw_b"]) @ P["c1_pw_w"] + P["c1_pw_b"]
    x2 = (y * P["c2_dw_s"] + P["c2_dw_b"]) @ P["c2_pw_w"] + P["c2_pw_b"]
    xc = jnp.clip(x1 + x2, 0.0, 6.0)
    xc = (xc * P["cc_dw_s"] + P["cc_dw_b"]) @ P["cc_pw_w"] + P["cc_pw_b"]
    xc = xc * P["bncc_scale"] + P["bncc_shift"]
    z = dw13_full(xc, P["dw2_w"], P["dw2_b"])
    z = z @ P["pw2_w"] + P["pw2_b"]
    z = z * P["bn2_scale"] + P["bn2_shift"]
    return jnp.transpose(z.reshape(N, H, W, C), (0, 3, 1, 2))


if __name__ == "__main__":
    key = jax.random.PRNGKey(0)
    kx, kp = jax.random.split(key)

    N, C, H, W = 2, 4, 16, 16                  # input is PyTorch NCHW
    x = jax.random.normal(kx, (N, C, H, W), jnp.float32)
    params = init_params(C, kp)

    out = jax.block_until_ready(custom_block_pallas(x, params))
    ref = jax.block_until_ready(custom_block_ref(x, params))

    assert out.shape == (N, C, H, W)
    # bf16 matmul operands (f32 accumulation) vs the all-f32 reference.
    assert jnp.allclose(out, ref, rtol=5e-2, atol=5e-2), (
        "mismatch vs reference, max abs err = %f"
        % float(jnp.max(jnp.abs(out - ref))))

    print("KERNEL_OK")
</pallas_src>

<mosaic_0001>
module attributes {stable_mosaic.version = 11 : i64} {
  func.func @custom_block_kernel(%arg0: i32, %arg1: memref<256x128xf32, #tpu.memory_space<vmem>>, %arg2: memref<8x128xf32, #tpu.memory_space<vmem>>, %arg3: memref<1x128xf32, #tpu.memory_space<vmem>>, %arg4: memref<128x128xbf16, #tpu.memory_space<vmem>>, %arg5: memref<128x128xbf16, #tpu.memory_space<vmem>>, %arg6: memref<128x128xbf16, #tpu.memory_space<vmem>>, %arg7: memref<256x128xf32, #tpu.memory_space<vmem>>) attributes {dimension_semantics = [#tpu.dimension_semantics<parallel>], iteration_bounds = array<i64: 2>, scalar_prefetch = 0 : i64, scratch_operands = 0 : i64, tpu.core_type = #tpu.core_type<tc>, window_params = [{transform_indices = @transform_0, window_bounds = array<i64: 256, 128>}, {pipeline_mode = #tpu.pipeline_mode<synchronous>, transform_indices = @transform_1, window_bounds = array<i64: 8, 128>}, {pipeline_mode = #tpu.pipeline_mode<synchronous>, transform_indices = @transform_2, window_bounds = array<i64: 1, 128>}, {pipeline_mode = #tpu.pipeline_mode<synchronous>, transform_indices = @transform_3, window_bounds = array<i64: 128, 128>}, {pipeline_mode = #tpu.pipeline_mode<synchronous>, transform_indices = @transform_4, window_bounds = array<i64: 128, 128>}, {pipeline_mode = #tpu.pipeline_mode<synchronous>, transform_indices = @transform_5, window_bounds = array<i64: 128, 128>}, {transform_indices = @transform_6, window_bounds = array<i64: 256, 128>}]} {
    %c0 = arith.constant 0 : index
    %c0_0 = arith.constant 0 : index
    %0 = vector.load %arg1[%c0, %c0_0] : memref<256x128xf32, #tpu.memory_space<vmem>>, vector<256x128xf32>
    %c0_1 = arith.constant 0 : index
    %c0_2 = arith.constant 0 : index
    %1 = vector.load %arg2[%c0_1, %c0_2] : memref<8x128xf32, #tpu.memory_space<vmem>>, vector<8x128xf32>
    %2 = vector.extract_strided_slice %1 {offsets = [0, 0], sizes = [1, 128], strides = [1, 1]} : vector<8x128xf32> to vector<1x128xf32>
    %3 = vector.extract_strided_slice %1 {offsets = [1, 0], sizes = [1, 128], strides = [1, 1]} : vector<8x128xf32> to vector<1x128xf32>
    %4 = vector.extract_strided_slice %1 {offsets = [2, 0], sizes = [1, 128], strides = [1, 1]} : vector<8x128xf32> to vector<1x128xf32>
    %5 = vector.extract_strided_slice %1 {offsets = [3, 0], sizes = [1, 128], strides = [1, 1]} : vector<8x128xf32> to vector<1x128xf32>
    %6 = vector.extract_strided_slice %1 {offsets = [4, 0], sizes = [1, 128], strides = [1, 1]} : vector<8x128xf32> to vector<1x128xf32>
    %7 = vector.extract_strided_slice %1 {offsets = [5, 0], sizes = [1, 128], strides = [1, 1]} : vector<8x128xf32> to vector<1x128xf32>
    %8 = vector.extract_strided_slice %1 {offsets = [6, 0], sizes = [1, 128], strides = [1, 1]} : vector<8x128xf32> to vector<1x128xf32>
    %9 = vector.extract_strided_slice %1 {offsets = [7, 0], sizes = [1, 128], strides = [1, 1]} : vector<8x128xf32> to vector<1x128xf32>
    %c0_3 = arith.constant 0 : index
    %c0_4 = arith.constant 0 : index
    %10 = vector.load %arg3[%c0_3, %c0_4] : memref<1x128xf32, #tpu.memory_space<vmem>>, vector<1x128xf32>
    %11 = tpu.iota {dimensions = array<i32: 0>} : vector<256x128xi32>
    %c16_i32 = arith.constant 16 : i32
    %c0_i32 = arith.constant 0 : i32
    %12 = arith.cmpi eq, %c16_i32, %c0_i32 : i32
    %c1_i32 = arith.constant 1 : i32
    %13 = arith.select %12, %c1_i32, %c16_i32 : i32
    %14 = vector.broadcast %13 : i32 to vector<256x128xi32>
    %15 = arith.remsi %11, %14 : vector<256x128xi32>
    %c0_i32_5 = arith.constant 0 : i32
    %16 = vector.broadcast %c0_i32_5 : i32 to vector<256x128xi32>
    %17 = arith.cmpi ne, %15, %16 : vector<256x128xi32>
    %c0_i32_6 = arith.constant 0 : i32
    %18 = vector.broadcast %c0_i32_6 : i32 to vector<256x128xi32>
    %19 = arith.cmpi slt, %15, %18 : vector<256x128xi32>
    %c0_i32_7 = arith.constant 0 : i32
    %20 = arith.cmpi slt, %13, %c0_i32_7 : i32
    %21 = vector.broadcast %20 : i1 to vector<256x128xi1>
    %22 = vector.broadcast %21 : vector<256x128xi1> to vector<256x128xi1>
    %23 = arith.xori %19, %22 : vector<256x128xi1>
    %24 = arith.andi %23, %17 : vector<256x128xi1>
    %25 = vector.broadcast %13 : i32 to vector<256x128xi32>
    %26 = arith.addi %15, %25 : vector<256x128xi32>
    %27 = arith.select %24, %26, %15 : vector<256x128xi1>, vector<256x128xi32>
    %c0_i32_8 = arith.constant 0 : i32
    %28 = vector.broadcast %c0_i32_8 : i32 to vector<256x128xi32>
    %29 = arith.cmpi ne, %27, %28 : vector<256x128xi32>
    %c15_i32 = arith.constant 15 : i32
    %30 = vector.broadcast %c15_i32 : i32 to vector<256x128xi32>
    %31 = arith.cmpi ne, %27, %30 : vector<256x128xi32>
    %c1_i32_9 = arith.constant 1 : i32
    %32 = tpu.dynamic_rotate %0 by %c1_i32_9 dim 0 : vector<256x128xf32>, i32 -> vector<256x128xf32>
    %cst = arith.constant 0.000000e+00 : f32
    %33 = vector.broadcast %cst : f32 to vector<256x128xf32>
    %34 = arith.select %29, %32, %33 : vector<256x128xi1>, vector<256x128xf32>
    %c255_i32 = arith.constant 255 : i32
    %35 = tpu.dynamic_rotate %0 by %c255_i32 dim 0 : vector<256x128xf32>, i32 -> vector<256x128xf32>
    %cst_10 = arith.constant 0.000000e+00 : f32
    %36 = vector.broadcast %cst_10 : f32 to vector<256x128xf32>
    %37 = arith.select %31, %35, %36 : vector<256x128xi1>, vector<256x128xf32>
    %38 = vector.broadcast %2 : vector<1x128xf32> to vector<256x128xf32>
    %39 = arith.mulf %38, %34 : vector<256x128xf32>
    %40 = vector.broadcast %3 : vector<1x128xf32> to vector<256x128xf32>
    %41 = arith.mulf %40, %0 : vector<256x128xf32>
    %42 = arith.addf %39, %41 : vector<256x128xf32>
    %43 = vector.broadcast %4 : vector<1x128xf32> to vector<256x128xf32>
    %44 = arith.mulf %43, %37 : vector<256x128xf32>
    %45 = arith.addf %42, %44 : vector<256x128xf32>
    %46 = arith.truncf %45 : vector<256x128xf32> to vector<256x128xbf16>
    %c0_11 = arith.constant 0 : index
    %c0_12 = arith.constant 0 : index
    %47 = vector.load %arg4[%c0_11, %c0_12] : memref<128x128xbf16, #tpu.memory_space<vmem>>, vector<128x128xbf16>
    %cst_13 = arith.constant dense<0.000000e+00> : vector<256x128xf32>
    %48 = tpu.matmul %46, %47, %cst_13 {dimension_numbers = #tpu.dot_dimension_numbers<[1], [0], [0], [1], [0, 0, 1, 1], [], []>} : vector<256x128xbf16>, vector<128x128xbf16>, vector<256x128xf32> -> vector<256x128xf32>
    %49 = vector.broadcast %10 : vector<1x128xf32> to vector<256x128xf32>
    %50 = arith.addf %48, %49 : vector<256x128xf32>
    %cst_14 = arith.constant 0.000000e+00 : f32
    %cst_15 = arith.constant 6.000000e+00 : f32
    %51 = vector.broadcast %cst_14 : f32 to vector<256x128xf32>
    %52 = arith.maximumf %51, %50 : vector<256x128xf32>
    %53 = vector.broadcast %cst_15 : f32 to vector<256x128xf32>
    %54 = arith.minimumf %53, %52 : vector<256x128xf32>
    %55 = arith.truncf %54 : vector<256x128xf32> to vector<256x128xbf16>
    %c0_16 = arith.constant 0 : index
    %c0_17 = arith.constant 0 : index
    %56 = vector.load %arg5[%c0_16, %c0_17] : memref<128x128xbf16, #tpu.memory_space<vmem>>, vector<128x128xbf16>
    %cst_18 = arith.constant dense<0.000000e+00> : vector<256x128xf32>
    %57 = tpu.matmul %55, %56, %cst_18 {dimension_numbers = #tpu.dot_dimension_numbers<[1], [0], [0], [1], [0, 0, 1, 1], [], []>} : vector<256x128xbf16>, vector<128x128xbf16>, vector<256x128xf32> -> vector<256x128xf32>
    %58 = vector.broadcast %8 : vector<1x128xf32> to vector<256x128xf32>
    %59 = arith.addf %57, %58 : vector<256x128xf32>
    %c1_i32_19 = arith.constant 1 : i32
    %60 = tpu.dynamic_rotate %59 by %c1_i32_19 dim 0 : vector<256x128xf32>, i32 -> vector<256x128xf32>
    %cst_20 = arith.constant 0.000000e+00 : f32
    %61 = vector.broadcast %cst_20 : f32 to vector<256x128xf32>
    %62 = arith.select %29, %60, %61 : vector<256x128xi1>, vector<256x128xf32>
    %c255_i32_21 = arith.constant 255 : i32
    %63 = tpu.dynamic_rotate %59 by %c255_i32_21 dim 0 : vector<256x128xf32>, i32 -> vector<256x128xf32>
    %cst_22 = arith.constant 0.000000e+00 : f32
    %64 = vector.broadcast %cst_22 : f32 to vector<256x128xf32>
    %65 = arith.select %31, %63, %64 : vector<256x128xi1>, vector<256x128xf32>
    %66 = vector.broadcast %5 : vector<1x128xf32> to vector<256x128xf32>
    %67 = arith.mulf %66, %62 : vector<256x128xf32>
    %68 = vector.broadcast %6 : vector<1x128xf32> to vector<256x128xf32>
    %69 = arith.mulf %68, %59 : vector<256x128xf32>
    %70 = arith.addf %67, %69 : vector<256x128xf32>
    %71 = vector.broadcast %7 : vector<1x128xf32> to vector<256x128xf32>
    %72 = arith.mulf %71, %65 : vector<256x128xf32>
    %73 = arith.addf %70, %72 : vector<256x128xf32>
    %74 = arith.truncf %73 : vector<256x128xf32> to vector<256x128xbf16>
    %c0_23 = arith.constant 0 : index
    %c0_24 = arith.constant 0 : index
    %75 = vector.load %arg6[%c0_23, %c0_24] : memref<128x128xbf16, #tpu.memory_space<vmem>>, vector<128x128xbf16>
    %cst_25 = arith.constant dense<0.000000e+00> : vector<256x128xf32>
    %76 = tpu.matmul %74, %75, %cst_25 {dimension_numbers = #tpu.dot_dimension_numbers<[1], [0], [0], [1], [0, 0, 1, 1], [], []>} : vector<256x128xbf16>, vector<128x128xbf16>, vector<256x128xf32> -> vector<256x128xf32>
    %77 = vector.broadcast %9 : vector<1x128xf32> to vector<256x128xf32>
    %78 = arith.addf %76, %77 : vector<256x128xf32>
    %c0_26 = arith.constant 0 : index
    %c0_27 = arith.constant 0 : index
    %79 = vector.load %arg7[%c0_26, %c0_27] : memref<256x128xf32, #tpu.memory_space<vmem>>, vector<256x128xf32>
    tpu.vector_store %arg7[%c0_26, %c0_27], %78 {strides = array<i32>} : memref<256x128xf32, #tpu.memory_space<vmem>>, vector<256x128xf32>,
    return
  }
  func.func @transform_0(%arg0: i32) -> (i32, i32) {
    %c0_i32 = arith.constant 0 : i32
    %c0_i32_0 = arith.constant 0 : i32
    return %arg0, %c0_i32 : i32, i32
  }
  func.func @transform_1(%arg0: i32) -> (i32, i32) {
    %c0_i32 = arith.constant 0 : i32
    %c0_i32_0 = arith.constant 0 : i32
    %c0_i32_1 = arith.constant 0 : i32
    return %c0_i32, %c0_i32_0 : i32, i32
  }
  func.func @transform_2(%arg0: i32) -> (i32, i32) {
    %c0_i32 = arith.constant 0 : i32
    %c0_i32_0 = arith.constant 0 : i32
    %c0_i32_1 = arith.constant 0 : i32
    return %c0_i32, %c0_i32_0 : i32, i32
  }
  func.func @transform_3(%arg0: i32) -> (i32, i32) {
    %c0_i32 = arith.constant 0 : i32
    %c0_i32_0 = arith.constant 0 : i32
    %c0_i32_1 = arith.constant 0 : i32
    return %c0_i32, %c0_i32_0 : i32, i32
  }
  func.func @transform_4(%arg0: i32) -> (i32, i32) {
    %c0_i32 = arith.constant 0 : i32
    %c0_i32_0 = arith.constant 0 : i32
    %c0_i32_1 = arith.constant 0 : i32
    return %c0_i32, %c0_i32_0 : i32, i32
  }
  func.func @transform_5(%arg0: i32) -> (i32, i32) {
    %c0_i32 = arith.constant 0 : i32
    %c0_i32_0 = arith.constant 0 : i32
    %c0_i32_1 = arith.constant 0 : i32
    return %c0_i32, %c0_i32_0 : i32, i32
  }
  func.func @transform_6(%arg0: i32) -> (i32, i32) {
    %c0_i32 = arith.constant 0 : i32
    %c0_i32_0 = arith.constant 0 : i32
    return %arg0, %c0_i32 : i32, i32
  }
}

</mosaic_0001>

<bundles_post_ra>
// kernel: tpu_custom_call.1
= control target key start
LH: loop header
LB: loop body
LE: loop exit
PB: predicated region body
PF: predicated region fallthrough
CT: control target
= control target key end

     0   :  { %11 = vsyncpa [#allocation3], 0  ;;  %s4668_s0 = inlined_call_operand.hbm [shape: f32[512,128], index: 0, kind: input, shape index: {}]   ;;  %s4669_s1 = inlined_call_operand.hbm [shape: f32[8,128], index: 1, kind: input, shape index: {}]   ;;  %s4670_s2 = inlined_call_operand.vmem [shape: f32[1,128], index: 2, kind: input, shape index: {}]   ;;  %s4671_s3 = inlined_call_operand.hbm [shape: bf16[128,128], index: 3, kind: input, shape index: {}]   ;;  %s4672_s4 = inlined_call_operand.hbm [shape: bf16[128,128], index: 4, kind: input, shape index: {}]   ;;  %s4673_s5 = inlined_call_operand.hbm [shape: bf16[128,128], index: 5, kind: input, shape index: {}]   ;;  %s4674_s6 = inlined_call_operand.hbm [shape: f32[512,128], index: 6, kind: output, shape index: {}]  }
   0x1   :  { %13 = vsyncpa [#allocation3 + $0x1], 0 }
   0x2   :  { %14 = vsyncpa [#allocation6], 0 }
   0x3   :  { %15 = vsyncpa [#allocation9], 0 }
   0x4   :  { %16 = vsyncpa [#allocation4], 0 }
   0x5   :  { %18 = vsyncpa [#allocation4 + $0x1], 0  ;;  %s3197_s21 = smov 0   ;;  %s3199_s22 = smov 0  }
   0x6   :  { %s3201_s23 = smov 0   ;;  %s3203_s24 = smov 0  }
   0x7 LB: > { %s3218_s25 = sadd.s32 4294967295, %s3148_s24   ;;  %s2532_s26 = sadd.s32 4294967294, %s3148_s24   ;;  %s3148_s24 = sphi %s3203_s24, %s4919_s24   ;;  %s3144_s23 = sphi %s3201_s23, %s4918_s23   ;;  %s3140_s22 = sphi %s3199_s22, %s4917_s22   ;;  %s3136_s21 = sphi %s3197_s21, %s4916_s21  }
   0x8   : > { %p44_p0 = scmp.ne.s32.totalorder %s3140_s22, %s3136_s21  ;;  %p4675_p1 = scmp.eq.s32.totalorder %s3218_s25, 0 }
   0x9   : > { %p179_p3 = scmp.eq.s32.totalorder %s2532_s26, 1  ;;  %p2533_p5 = scmp.ge.s32.totalorder %s3148_s24, 1 }
   0xa   : > { %p3227_p4 = por %p4675_p1, %p44_p0  ;;  %p186_p7 = scmp.lt.s32.totalorder %s3148_s24, 3 }
   0xb   : > { %p3232_p6 = por %p179_p3, %p44_p0  ;;  %s3150_s30 = smov [#allocation5]  }
   0xc   : > { %s4707_s27 = scalar_select %p3227_p4, 1, 0 }
   0xd   : > { %s4708_s28 = scalar_select %p3232_p6, 1, 0 }
   0xe   : > { %p3237_p8 = pnand %p2533_p5, %p186_p7  ;;  %s199_s7 = sshll.u32 %s3150_s30, 4  ;;  %s200_s7 = int_to_ptr.vmem [resolvable:$true] %s199_s7 }
   0xf   : > { %s3151_s9 = smov [#allocation8]   ;;  %s3152_s11 = smov [#allocation7]  }
  0x10   : > { %s4709_s29 = scalar_select %p3237_p8, 1, 0 }
  0x11   : > { %p2833_p10 = pneg %p3237_p8  ;;  %s225_s10 = sshll.u32 %s3151_s9, 4  ;;  %s3250_s10 = int_to_ptr.vmem [resolvable:$true] %s225_s10 }
  0x12   : > { %s3252_s12 = sshll.u32 %s3152_s11, 4  ;;  %s2932_s15 = scalar_lea.hbm %s4669_s1, 128  ;;  %s213_s12 = int_to_ptr.vmem [resolvable:$true] %s3252_s12 }
  0x13   : > { %p3246_p11 = pnand %p2833_p10, %p4675_p1  ;;  %p2933_p12 = scmp.ne.s32.totalorder %s4669_s1, %s2932_s15 }
  0x14   : > { %p2939_p5 = scmp.lt.u32.totalorder %s2932_s15, %s4669_s1 }
  0x15   : > { %p3262_p13 = pneg %p3246_p11 }
  0x17   : > { %p2935_p0 = pnand %p3262_p13, %p2933_p12 }
  0x19   : > { %p2936_p3 = pneg %p2935_p0 }
  0x1b   : > { %p2941_p7 = pnand %p2939_p5, %p2936_p3 }
  0x1d   : > { %2944 = shalt.err (!%p2941_p7)
}
  0x1e   : > { %s2945_s26 = scalar_lea.vmem %s200_s7, 128  ;;  %p2953_p2 = scmp.lt.s32.totalorder %s200_s7, %s200_s7 }
  0x1f   : > { %p2946_p10 = scmp.ne.s32.totalorder %s200_s7, %s2945_s26  ;;  %p2954_p6 = scmp.lt.s32.totalorder %s2945_s26, %s2945_s26 }
  0x21   : > { %p2948_p9 = pnand %p2946_p10, %p3262_p13  ;;  %p2955_p4 = por %p2954_p6, %p2953_p2 }
  0x23   : > { %p2949_p1 = pneg %p2948_p9 }
  0x25   : > { %p2956_p8 = pnand %p2955_p4, %p2949_p1 }
  0x27   : > { %2959 = shalt.err (!%p2956_p8)
}
  0x28   : > { %2836 = dma.hbm_to_vmem [thread:$0]  (!%p3246_p11), %s4669_s1, 128, %s200_s7, [#allocation6]  }
  0x29   : > { %s2960_s14 = scalar_lea.hbm %s4672_s4, 1024 }
  0x2a   : > { %p2961_p9 = scmp.ne.s32.totalorder %s4672_s4, %s2960_s14  ;;  %p2967_p1 = scmp.lt.u32.totalorder %s2960_s14, %s4672_s4 }
  0x2c   : > { %p2963_p12 = pnand %p2961_p9, %p3262_p13 }
  0x2e   : > { %p2964_p2 = pneg %p2963_p12 }
  0x30   : > { %p2969_p4 = pnand %p2967_p1, %p2964_p2 }
  0x32   : > { %2972 = shalt.err (!%p2969_p4)
}
  0x33   : > { %s2973_s7 = scalar_lea.vmem %s3250_s10, 1024  ;;  %p2981_p3 = scmp.lt.s32.totalorder %s3250_s10, %s3250_s10 }
  0x34   : > { %p2974_p6 = scmp.ne.s32.totalorder %s3250_s10, %s2973_s7  ;;  %p2982_p5 = scmp.lt.s32.totalorder %s2973_s7, %s2973_s7 }
  0x36   : > { %p2976_p8 = pnand %p2974_p6, %p3262_p13  ;;  %p2983_p7 = por %p2982_p5, %p2981_p3 }
  0x38   : > { %p2977_p0 = pneg %p2976_p8 }
  0x3a   : > { %p2984_p10 = pnand %p2983_p7, %p2977_p0 }
  0x3c   : > { %2987 = shalt.err (!%p2984_p10)
}
  0x3d   : > { %s3153_s20 = smov 64   ;;  %s3154_s26 = smov 4  }
  0x3e   : > { %2842 = dma.hbm_to_vmem [thread:$0]  (!%p3246_p11), %s4672_s4, 1024, %s3250_s10, [#allocation9], %s3153_s20, %s3153_s20, %s3154_s26  }
  0x3f   : > { %s2988_s14 = scalar_lea.hbm %s4671_s3, 1024 }
  0x40   : > { %p2989_p9 = scmp.ne.s32.totalorder %s4671_s3, %s2988_s14  ;;  %p2995_p1 = scmp.lt.u32.totalorder %s2988_s14, %s4671_s3 }
  0x42   : > { %p2991_p12 = pnand %p2989_p9, %p3262_p13 }
  0x44   : > { %p2992_p2 = pneg %p2991_p12 }
  0x46   : > { %p2997_p4 = pnand %p2995_p1, %p2992_p2 }
  0x48   : > { %3000 = shalt.err (!%p2997_p4)
}
  0x49   : > { %s3001_s7 = scalar_lea.vmem %s213_s12, 1024  ;;  %p3009_p3 = scmp.lt.s32.totalorder %s213_s12, %s213_s12 }
  0x4a   : > { %p3002_p6 = scmp.ne.s32.totalorder %s213_s12, %s3001_s7  ;;  %p3010_p5 = scmp.lt.s32.totalorder %s3001_s7, %s3001_s7 }
  0x4c   : > { %p3004_p8 = pnand %p3002_p6, %p3262_p13  ;;  %p3011_p7 = por %p3010_p5, %p3009_p3 }
  0x4e   : > { %p3005_p0 = pneg %p3004_p8 }
  0x50   : > { %p3012_p10 = pnand %p3011_p7, %p3005_p0 }
  0x52   : > { %3015 = shalt.err (!%p3012_p10)
}
  0x53   : > { %2839 = dma.hbm_to_vmem [thread:$0]  (!%p3246_p11), %s4671_s3, 1024, %s213_s12, [#allocation6], %s3153_s20, %s3153_s20, %s3154_s26  }
  0x54   : > { %s3155_s9 = smov [#allocation10]   ;;  %s3016_s15 = scalar_lea.hbm %s4673_s5, 1024 }
  0x55   : > { %s238_s11 = sshll.u32 %s3155_s9, 4  ;;  %p3017_p9 = scmp.ne.s32.totalorder %s4673_s5, %s3016_s15  ;;  %s239_s11 = int_to_ptr.vmem [resolvable:$true] %s238_s11 }
  0x56   : > { %p3023_p1 = scmp.lt.u32.totalorder %s3016_s15, %s4673_s5 }
  0x57   : > { %p3019_p12 = pnand %p3017_p9, %p3262_p13 }
  0x59   : > { %p3020_p2 = pneg %p3019_p12 }
  0x5b   : > { %p3025_p4 = pnand %p3023_p1, %p3020_p2 }
  0x5d   : > { %3028 = shalt.err (!%p3025_p4)
}
  0x5e   : > { %s3029_s12 = scalar_lea.vmem %s239_s11, 1024  ;;  %p3037_p3 = scmp.lt.s32.totalorder %s239_s11, %s239_s11 }
  0x5f   : > { %p3030_p6 = scmp.ne.s32.totalorder %s239_s11, %s3029_s12  ;;  %p3038_p5 = scmp.lt.s32.totalorder %s3029_s12, %s3029_s12 }
  0x61   : > { %p3032_p8 = pnand %p3030_p6, %p3262_p13  ;;  %p3039_p7 = por %p3038_p5, %p3037_p3 }
  0x63   : > { %p3033_p0 = pneg %p3032_p8 }
  0x65   : > { %p3040_p10 = pnand %p3039_p7, %p3033_p0 }
  0x67   : > { %3043 = shalt.err (!%p3040_p10)
}
  0x68   : > { %2845 = dma.hbm_to_vmem [thread:$0]  (!%p3246_p11), %s4673_s5, 1024, %s239_s11, [#allocation9], %s3153_s20, %s3153_s20, %s3154_s26  }
  0x69   : > { %s3348_s18 = sadd.s32 1, %s3148_s24   ;;  %s31_s8 = sadd.s32 1, %s3144_s23 }
  0x6a   : > { %s28_s9 = ssub.s32 %s3148_s24, %s3348_s18  ;;  %p38_p13 = scmp.ne.s32.totalorder %s3144_s23, %s3140_s22 }
  0x6b   : > { %p29_p9 = scmp.eq.s32.totalorder %s28_s9, 0  ;;  %p39_p12 = scmp.eq.s32.totalorder %s3148_s24, 0 }
  0x6c   : > { %p4712_p2 = scmp.eq.s32.totalorder %s3218_s25, 1  ;;  %p2858_p4 = scmp.lt.s32.totalorder %s3148_s24, 2 }
  0x6d   : > { %s3364_s14 = scalar_select %p29_p9, %s3144_s23, %s31_s8  }
  0x6e   : > { %p3358_p1 = por %p4712_p2, %p38_p13  ;;  %p40_p6 = por %p39_p12, %p38_p13 }
  0x6f   : > { %s252_s15 = sand.u32 1, %s3144_s23   ;;  %s2579_s20 = sshll.u32 %s3148_s24, 12 }
  0x70   : > { %s2539_s16 = sshll.u32 %s252_s15, 8  ;;  %s3371_s17 = scalar_lea.hbm %s4668_s0, %s2579_s20 }
  0x71   : > { %s256_s19 = scalar_lea.vmem [#allocation2], %s2539_s16  ;;  %p3375_p11 = pnand %p2858_p4, %p40_p6 }
  0x72   : > { %s263_s7 = sshll.u32 %s256_s19, 4  ;;  %s3379_s10 = scalar_lea.sflag [#allocation3], %s252_s15  ;;  %s3373_s7 = int_to_ptr.vmem [resolvable:$true] %s263_s7 }
  0x73   : > { %s3044_s30 = scalar_lea.hbm %s3371_s17, 4096  ;;  %p3046_p0 = pneg %p3375_p11 }
  0x74   : > { %p3045_p8 = scmp.ne.s32.totalorder %s3371_s17, %s3044_s30  ;;  %s3049_s16 = scalar_lea.hbm %s4668_s0, 8192 }
  0x75   : > { %p3050_p7 = scmp.lt.u32.totalorder %s3371_s17, %s4668_s0  ;;  %p3051_p10 = scmp.lt.u32.totalorder %s3049_s16, %s3044_s30 }
  0x76   : > { %p3047_p3 = pnand %p3046_p0, %p3045_p8  ;;  %p3053_p9 = scmp.lt.u32.totalorder %s3044_s30, %s3371_s17 }
  0x77   : > { %p3052_p13 = por %p3051_p10, %p3050_p7 }
  0x78   : > { %p3048_p5 = pneg %p3047_p3 }
  0x79   : > { %p3054_p12 = por %p3053_p9, %p3052_p13 }
  0x7b   : > { %p3055_p2 = pnand %p3054_p12, %p3048_p5 }
  0x7d   : > { %3058 = shalt.err (!%p3055_p2)
}
  0x7e   : > { %s3059_s15 = scalar_lea.vmem %s3373_s7, 4096  ;;  %s3156_s11 = smov [#allocation2]  }
  0x7f   : > { %p3060_p4 = scmp.ne.s32.totalorder %s3373_s7, %s3059_s15  ;;  %s3064_s19 = sshll.u32 %s3156_s11, 4  ;;  %s3065_s19 = int_to_ptr.vmem [resolvable:$false] %s3064_s19 }
  0x80   : > { %s3066_s8 = scalar_lea.vmem %s3065_s19, 8192  ;;  %p3067_p3 = scmp.lt.s32.totalorder %s3373_s7, %s3065_s19 }
  0x81   : > { %p3062_p6 = pnand %p3060_p4, %p3046_p0  ;;  %p3068_p7 = scmp.lt.s32.totalorder %s3066_s8, %s3059_s15 }
  0x83   : > { %p3063_p8 = pneg %p3062_p6  ;;  %p3069_p10 = por %p3068_p7, %p3067_p3 }
  0x85   : > { %p3070_p13 = pnand %p3069_p10, %p3063_p8 }
  0x87   : > { %3073 = shalt.err (!%p3070_p13)
}
  0x88   : > { %s3157_s30 = smov 128   ;;  %s3158_s9 = smov 8  }
  0x89   : > { %2849 = dma.hbm_to_vmem [thread:$0]  (!%p3375_p11), %s3371_s17, 4096, %s3373_s7, %s3379_s10, %s3157_s30, %s3157_s30, %s3158_s9  }
  0x8a   : > { %p4715_p0 = scmp.ne.s32.totalorder %s4709_s29, 0 }
  0x8c   : > { %275 = sbr.rel (%p4715_p0) target bundleno = 1030 (0x406), region = 44 }
  0x93   : > { %s3410_s16 = sand.u32 1, %s3140_s22   ;;  %p4716_p5 = scmp.ne.s32.totalorder %s4707_s27, 0 }
  0x94   : > { %s2543_s20 = sshll.u32 %s3410_s16, 8  ;;  %s278_s26 = scalar_lea.sflag [#allocation3], %s3410_s16 }
  0x95   : > { %s3416_s15 = scalar_lea.vmem [#allocation2], %s2543_s20 }
  0x96   : > { %3119 = dma.done.wait (%p4716_p5), %s278_s26, 4096  }
  0x97   : > { %3121 = vsyncadd (%p4716_p5), %s278_s26, 4294963200  ;;  %p4717_p11 = scmp.eq.s32.totalorder %s3218_s25, 0 }
  0x99   : > { %3123 = dma.done.wait (%p4717_p11), [#allocation6], 1152   ;;  %p4718_p9 = pmov %p4717_p11 }
  0x9b   : > { %3125 = vsyncadd (%p4718_p9), [#allocation6], 4294966144  ;;  %p4719_p12 = pmov %p4718_p9 }
  0x9c   : > { %p4720_p2 = pmov %p4718_p9 }
  0x9d   : > { %3127 = dma.done.wait (%p4719_p12), [#allocation9], 2048  }
  0x9e   : > { %3129 = vsyncadd (%p4720_p2), [#allocation9], 4294965248  ;;  %v363_v0 = vlaneseq  ;;  %v2906_v7 = vld [vmem:[#allocation7] sm:$0xff]   ;;  %v2907_v9 = vld [vmem:[#allocation7 + $0x8] sm:$0xff]   ;;  %v4721_v16 = vmov 0  ;;  %s4553_s17 = scalar_lea.vmem [#allocation11], %s2543_s20 }
  0x9f   : > { %2653 = vmatprep.subr.bf16.mxu0 %v2906_v7  ;;  %2797 = vmatprep.subr.bf16.mxu1 %v2906_v7  ;;  %v2908_v15 = vld [vmem:[#allocation7 + $0x10] sm:$0xff]   ;;  %v2909_v19 = vld [vmem:[#allocation7 + $0x18] sm:$0xff]   ;;  %v330_v24 = vld [vmem:[%s3416_s15 + $0x8] sm:$0xff]  ;;  %s2580_s7 = sshll.u32 %s3218_s25, 12  ;;  %s2421_s12 = sshll.u32 %s4553_s17, 4  ;;  %s4620_s12 = int_to_ptr.vmem [resolvable:$true] %s2421_s12 }
  0xa0   : > { %v3430_v1 = vshrl.u32 %v363_v0, 7  ;;  %2654 = vmatpush3.bf16.msra.mxu0 %v2906_v7  ;;  %2805 = vmatpush3.bf16.msra.mxu1 %v2906_v7  ;;  %v3462_v23 = vld [vmem:[%s3416_s15] sm:$0xff]  ;;  %v331_v25 = vld [vmem:[%s3416_s15 + $0x10] sm:$0xff]  ;;  %v3474_v29 = vld [vmem:[%s3416_s15 + $0xf8] sm:$0xff]  ;;  %v845_v32 = vrot.slane %v330_v24, 7  ;;  %v942_v36 = vrot.slane %v330_v24, 1  ;;  %s4618_s19 = scalar_lea.hbm %s4674_s6, %s2580_s7 }
  0xa1   : > { %2655 = vmatprep.subr.bf16.mxu0 %v2907_v9  ;;  %2798 = vmatprep.subr.bf16.mxu1 %v2907_v9  ;;  %v361_v30 = vld [vmem:[#allocation5] sm:$0xff]  ;;  %v844_v31 = vrot.slane %v3462_v23, 7  ;;  %v846_v33 = vrot.slane %v331_v25, 7  ;;  %v941_v34 = vrot.slane %v3462_v23, 1  ;;  %v875_v35 = vrot.slane %v3474_v29, 7  ;;  %v3482_v39 = vld [vmem:[%s3416_s15 + $0x18] sm:$0xff] }
  0xa2   : > { %v365_v2 = vadd.s32 8, %v3430_v1  ;;  %v366_v3 = vadd.s32 16, %v3430_v1  ;;  %v400_v4 = vand.u32 15, %v3430_v1  ;;  %v1040_v5 = vsub.s32 0, %v3430_v1  ;;  %v2910_v45 = vld [vmem:[#allocation7 + $0x20] sm:$0xff]   ;;  %v333_v50 = vld [vmem:[%s3416_s15 + $0x20] sm:$0xff] }
  0xa3   : > { %v367_v6 = vadd.s32 24, %v3430_v1  ;;  %vm4683_vm0 = vcmp.lt.s32.totalorder %v3430_v1, 1  ;;  %v1076_v8 = vsub.s32 1, %v3430_v1  ;;  %vm4678_vm1 = vcmp.lt.s32.totalorder %v3430_v1, 7  ;;  %v2911_v63 = vld [vmem:[#allocation7 + $0x28] sm:$0xff]   ;;  %s2408_s25 = scalar_lea.sflag [#allocation4], %s3410_s16 }
  0xa4   : > { %v407_v10 = vand.u32 15, %v365_v2  ;;  %v1144_v11 = vsub.s32 2, %v3430_v1  ;;  %v414_v12 = vand.u32 15, %v366_v3  ;;  %v368_v14 = vadd.s32 32, %v3430_v1  ;;  %2656 = vmatpush3.bf16.msra.mxu0 %v2907_v9  ;;  %2806 = vmatpush3.bf16.msra.mxu1 %v2907_v9  ;;  %v334_v9 = vld [vmem:[%s3416_s15 + $0x28] sm:$0xff]  ;;  %s3074_s8 = scalar_lea.vmem %s4620_s12, 4096 }
  0xa5   : > { %v421_v13 = vand.u32 15, %v367_v6  ;;  %vm3442_vm2 = vcmp.ne.s32.totalorder %v400_v4, 0  ;;  %v3451_v18 = vadd.s32 40, %v3430_v1  ;;  %2657 = vmatprep.subr.bf16.mxu0 %v2908_v15  ;;  %2799 = vmatprep.subr.bf16.mxu1 %v2908_v15  ;;  %v3468_v27 = vadd.s32 48, %v3430_v1  ;;  %p3075_p4 = scmp.ne.s32.totalorder %s4620_s12, %s3074_s8  ;;  %s3159_s30 = smov [#allocation11]  }
  0xa6   : > { %v4722_v16 = vsel %vm3442_vm2, 4294967295, %v4721_v16  ;;  %vm3446_vm3 = vcmp.ne.s32.totalorder %v407_v10, 15  ;;  %vm3453_vm4 = vcmp.ne.s32.totalorder %v414_v12, 0  ;;  %v428_v22 = vand.u32 15, %v368_v14  ;;  %v335_v14 = vld [vmem:[%s3416_s15 + $0x30] sm:$0xff]  ;;  %s3078_s9 = sshll.u32 %s3159_s30, 4  ;;  %s3079_s9 = int_to_ptr.vmem [resolvable:$false] %s3078_s9 }
  0xa7   : > { %vm3457_vm5 = vcmp.ne.s32.totalorder %v421_v13, 15  ;;  %v435_v26 = vand.u32 15, %v3451_v18  ;;  %v3471_v28 = vadd.s32 56, %v3430_v1  ;;  %v943_v37 = vrot.slane %v331_v25, 1  ;;  %p3076_p6 = pnand %p3075_p4, %p3358_p1  ;;  %s3080_s20 = scalar_lea.vmem %s3079_s9, 8192 }
  0xa8   : > { %v3479_v38 = vrot.slane %v361_v30, %v1040_v5  ;;  %2658 = vmatpush3.bf16.msra.mxu0 %v2908_v15  ;;  %v907_v40 = vsel %vm4683_vm0, %v844_v31, %v845_v32  ;;  %v3486_v41 = vrot.slane %v361_v30, %v1076_v8  ;;  %v3488_v42 = vrot.slane %v361_v30, %v1144_v11  ;;  %p3081_p3 = scmp.lt.s32.totalorder %s4620_s12, %s3079_s9  ;;  %p3082_p7 = scmp.lt.s32.totalorder %s3080_s20, %s3074_s8 }
  0xa9   : > { %v847_v43 = vrot.slane %v3482_v39, 7  ;;  %2807 = vmatpush3.bf16.msra.mxu1 %v2908_v15  ;;  %vm3491_vm6 = vcmp.ne.s32.totalorder %v428_v22, 0  ;;  %2659 = vmatprep.subr.bf16.mxu0 %v2909_v19  ;;  %v908_v46 = vsel %vm4683_vm0, %v875_v35, %v844_v31  ;;  %v1003_v47 = vsel %vm4678_vm1, %v942_v36, %v943_v37  ;;  %v2912_v15 = vld [vmem:[#allocation7 + $0x30] sm:$0xff]   ;;  %p3077_p8 = pneg %p3076_p6 }
  0xaa   : > { %v1004_v48 = vsel %vm4678_vm1, %v941_v34, %v942_v36  ;;  %v1043_v49 = vmul.f32 %v3479_v38, %v907_v40  ;;  %v909_v51 = vsel %vm3442_vm2, %v908_v46, 0.0  ;;  %v1007_v52 = vsel %vm3446_vm3, %v1003_v47, 0.0  ;;  %2800 = vmatprep.subr.bf16.mxu1 %v2909_v19  ;;  %p3083_p10 = por %p3082_p7, %p3081_p3 }
  0xab   : > { %v1078_v53 = vmul.f32 %v3486_v41, %v3462_v23  ;;  %v1079_v54 = vmul.f32 %v3486_v41, %v330_v24  ;;  %v1042_v55 = vmul.f32 %v3479_v38, %v909_v51  ;;  %v1146_v56 = vmul.f32 %v3488_v42, %v1004_v48  ;;  %v2913_v51 = vld [vmem:[#allocation7 + $0x38] sm:$0xff]  }
  0xac   : > { %v1147_v57 = vmul.f32 %v3488_v42, %v1007_v52  ;;  %v905_v58 = vsel %vm4683_vm0, %v846_v33, %v847_v43  ;;  %2660 = vmatpush3.bf16.msra.mxu0 %v2909_v19  ;;  %v906_v60 = vsel %vm4683_vm0, %v845_v32, %v846_v33  ;;  %v944_v61 = vrot.slane %v3482_v39, 1  ;;  %p3084_p13 = pnand %p3083_p10, %p3077_p8 }
  0xad   : > { %v1111_v59 = vadd.f32 %v1079_v54, %v1043_v49  ;;  %v945_v62 = vrot.slane %v333_v50, 1  ;;  %2808 = vmatpush3.bf16.msra.mxu1 %v2909_v19  ;;  %2661 = vmatprep.subr.bf16.mxu0 %v2910_v45  ;;  %v1110_v0 = vadd.f32 %v1078_v53, %v1042_v55  ;;  %v911_v2 = vsel %vm3453_vm4, %v906_v60, 0.0  ;;  %v3570_v55 = vld [vmem:[%s3416_s15 + $0x40] sm:$0xff] }
  0xae   : > { %v1045_v3 = vmul.f32 %v3479_v38, %v905_v58  ;;  %v1080_v4 = vmul.f32 %v3486_v41, %v331_v25  ;;  %2801 = vmatprep.subr.bf16.mxu1 %v2910_v45  ;;  %v1002_v7 = vsel %vm4678_vm1, %v943_v37, %v944_v61  ;;  %v1044_v8 = vmul.f32 %v3479_v38, %v911_v2 }
  0xaf   : > { %v1179_v5 = vadd.f32 %v1147_v57, %v1111_v59  ;;  %v1001_v6 = vsel %vm4678_vm1, %v944_v61, %v945_v62  ;;  %v1178_v10 = vadd.f32 %v1146_v56, %v1110_v0  ;;  %v1081_v12 = vmul.f32 %v3486_v41, %v3482_v39 }
  0xb0   : > { %v1009_v11 = vsel %vm3457_vm5, %v1001_v6, 0.0  ;;  %v1148_v13 = vmul.f32 %v3488_v42, %v1002_v7  ;;  %2662 = vmatpush3.bf16.msra.mxu0 %v2910_v45  ;;  %v1112_v19 = vadd.f32 %v1080_v4, %v1044_v8  ;;  %vm3541_vm7 = vcmp.ne.s32.totalorder %v435_v26, 15 }
  0xb1   : > { %v1149_v22 = vmul.f32 %v3488_v42, %v1009_v11  ;;  %v848_v25 = vrot.slane %v333_v50, 7  ;;  %2809 = vmatpush3.bf16.msra.mxu1 %v2910_v45  ;;  %2663 = vmatprep.subr.bf16.mxu0 %v2911_v63  ;;  %v1210_v30 = vpack.c.bf16 %v1179_v5, %v1178_v10  ;;  %v1113_v31 = vadd.f32 %v1081_v12, %v1045_v3  ;;  %v338_v12 = vld [vmem:[%s3416_s15 + $0x48] sm:$0xff] }
  0xb2   : > { %v849_v32 = vrot.slane %v334_v9, 7  ;;  %v946_v33 = vrot.slane %v334_v9, 1  ;;  %2802 = vmatprep.subr.bf16.mxu1 %v2911_v63  ;;  %v3545_v36 = vadd.f32 %v1148_v13, %v1112_v19  ;;  %v947_v39 = vrot.slane %v335_v14, 1 }
  0xb3   : > { %v904_v37 = vsel %vm4683_vm0, %v847_v43, %v848_v25  ;;  %v1082_v18 = vmul.f32 %v3486_v41, %v333_v50  ;;  %2669 = vmatprep.mubr.bf16.mxu0 %v1210_v30  ;;  %v3550_v26 = vadd.f32 %v1149_v22, %v1113_v31  ;;  %v1083_v49 = vmul.f32 %v3486_v41, %v334_v9  ;;  %v336_v50 = vld [vmem:[%s3416_s15 + $0x38] sm:$0xff] }
  0xb4   : > { %v903_v40 = vsel %vm4683_vm0, %v848_v25, %v849_v32  ;;  %v913_v45 = vsel %vm3491_vm6, %v904_v37, 0.0  ;;  %v1000_v46 = vsel %vm4678_vm1, %v945_v62, %v946_v33  ;;  %2664 = vmatpush3.bf16.msra.mxu0 %v2911_v63  ;;  %v999_v43 = vsel %vm4678_vm1, %v946_v33, %v947_v39  ;;  %v339_v25 = vld [vmem:[%s3416_s15 + $0x50] sm:$0xff]  ;;  %v3607_v33 = vld [vmem:[#allocation8] sm:$0xff]  }
  0xb5   : > { %v1046_v47 = vmul.f32 %v3479_v38, %v913_v45  ;;  %v1047_v48 = vmul.f32 %v3479_v38, %v903_v40  ;;  %2665 = vmatprep.subr.bf16.mxu0 %v2912_v15  ;;  %v1211_v52 = vpack.c.bf16 %v3550_v26, %v3545_v36  ;;  %v1011_v53 = vsel %vm3541_vm7, %v999_v43, 0.0  ;;  %2810 = vmatpush3.bf16.msra.mxu1 %v2911_v63  ;;  %v3612_v43 = vld [vmem:[%s3416_s15 + $0x58] sm:$0xff] }
  0xb6   : > { %v1150_v54 = vmul.f32 %v3488_v42, %v1000_v46  ;;  %v442_v56 = vand.u32 15, %v3468_v27  ;;  %v1151_v59 = vmul.f32 %v3488_v42, %v1011_v53  ;;  %v449_v60 = vand.u32 15, %v3471_v28  ;;  %2803 = vmatprep.subr.bf16.mxu1 %v2912_v15 }
  0xb7   : > { %v1114_v57 = vadd.f32 %v1082_v18, %v1046_v47  ;;  %v1115_v58 = vadd.f32 %v1083_v49, %v1047_v48  ;;  %v850_v62 = vrot.slane %v335_v14, 7  ;;  %v851_v0 = vrot.slane %v336_v50, 7 }
  0xb8   : > { %vm3575_vm8 = vcmp.ne.s32.totalorder %v442_v56, 0  ;;  %v948_v2 = vrot.slane %v336_v50, 1  ;;  %2666 = vmatpush3.bf16.msra.mxu0 %v2912_v15  ;;  %vm3579_vm9 = vcmp.ne.s32.totalorder %v449_v60, 15  ;;  %v949_v63 = vrot.slane %v3570_v55, 1  ;;  %v341_v60 = vld [vmem:[%s3416_s15 + $0x60] sm:$0xff] }
  0xb9   : > { %v1182_v3 = vadd.f32 %v1150_v54, %v1114_v57  ;;  %v1183_v4 = vadd.f32 %v1151_v59, %v1115_v58  ;;  %2667 = vmatprep.subr.bf16.mxu0 %v2913_v51  ;;  %v901_v28 = vsel %vm4683_vm0, %v850_v62, %v851_v0  ;;  %v902_v5 = vsel %vm4683_vm0, %v849_v32, %v850_v62 }
  0xba   : > { %v998_v6 = vsel %vm4678_vm1, %v947_v39, %v948_v2  ;;  %v1084_v7 = vmul.f32 %v3486_v41, %v335_v14  ;;  %v915_v9 = vsel %vm3575_vm8, %v902_v5, 0.0  ;;  %v997_v10 = vsel %vm4678_vm1, %v948_v2, %v949_v63  ;;  %2811 = vmatpush3.bf16.msra.mxu1 %v2912_v15 }
  0xbb   : > { %v1212_v8 = vpack.c.bf16 %v1183_v4, %v1182_v3  ;;  %v1049_v11 = vmul.f32 %v3479_v38, %v901_v28  ;;  %v1013_v13 = vsel %vm3579_vm9, %v997_v10, 0.0  ;;  %v1048_v19 = vmul.f32 %v3479_v38, %v915_v9  ;;  %2804 = vmatprep.subr.bf16.mxu1 %v2913_v51 }
  0xbc   : > { %v1085_v22 = vmul.f32 %v3486_v41, %v336_v50  ;;  %v1152_v14 = vmul.f32 %v3488_v42, %v998_v6  ;;  %2668 = vmatpush3.bf16.msra.mxu0 %v2913_v51  ;;  %v1153_v30 = vmul.f32 %v3488_v42, %v1013_v13  ;;  %v372_v31 = vadd.s32 64, %v3430_v1 }
  0xbd   : > { %v373_v32 = vadd.s32 72, %v3430_v1  ;;  %v852_v15 = vrot.slane %v3570_v55, 7  ;;  %v1116_v36 = vadd.f32 %v1084_v7, %v1048_v19  ;;  %v853_v39 = vrot.slane %v338_v12, 7 }
  0xbe   : > { %v1117_v37 = vadd.f32 %v1085_v22, %v1049_v11  ;;  %v950_v18 = vrot.slane %v338_v12, 1  ;;  %v456_v26 = vand.u32 15, %v372_v31  ;;  %v951_v46 = vrot.slane %v339_v25, 1  ;;  %2812 = vmatpush3.bf16.msra.mxu1 %v2913_v51 }
  0xbf   : > { %v463_v40 = vand.u32 15, %v373_v32  ;;  %v900_v45 = vsel %vm4683_vm0, %v851_v0, %v852_v15  ;;  %2670 = vmatmul.mubr.bf16.vlgmr.msra.gmra.mrb[0].mxu0 %v1211_v52  ;;  %v1184_v47 = vadd.f32 %v1152_v14, %v1116_v36  ;;  %v899_v49 = vsel %vm4683_vm0, %v852_v15, %v853_v39  ;;  %2701 = vmatprep.subr.bf16.mxu1 %v3607_v33  ;;  %v342_v36 = vld [vmem:[%s3416_s15 + $0x68] sm:$0xff] }
  0xc0   : > { %v1185_v48 = vadd.f32 %v1153_v30, %v1117_v37  ;;  %v996_v50 = vsel %vm4678_vm1, %v949_v63, %v950_v18  ;;  %2673 = vmatprep.mubr.bf16.mxu0 %v1212_v8  ;;  %vm3618_vm10 = vcmp.ne.s32.totalorder %v456_v26, 0  ;;  %v995_v51 = vsel %vm4678_vm1, %v950_v18, %v951_v46 }
  0xc1   : > { %vm3622_vm11 = vcmp.ne.s32.totalorder %v463_v40, 15  ;;  %v1051_v52 = vmul.f32 %v3479_v38, %v899_v49  ;;  %v917_v57 = vsel %vm3618_vm10, %v900_v45, 0.0  ;;  %v1086_v59 = vmul.f32 %v3486_v41, %v3570_v55  ;;  %v343_v40 = vld [vmem:[%s3416_s15 + $0x70] sm:$0xff] }
  0xc2   : > { %v1213_v56 = vpack.c.bf16 %v1185_v48, %v1184_v47  ;;  %v1015_v58 = vsel %vm3622_vm11, %v995_v51, 0.0  ;;  %v1050_v62 = vmul.f32 %v3479_v38, %v917_v57  ;;  %v1087_v0 = vmul.f32 %v3486_v41, %v338_v12 }
  0xc3   : > { %v1154_v2 = vmul.f32 %v3488_v42, %v996_v50  ;;  %v1155_v3 = vmul.f32 %v3488_v42, %v1015_v58  ;;  %v374_v4 = vadd.s32 80, %v3430_v1  ;;  %v375_v63 = vadd.s32 88, %v3430_v1 }
  0xc4   : > { %v854_v28 = vrot.slane %v339_v25, 7  ;;  %v855_v5 = vrot.slane %v3612_v43, 7  ;;  %v1118_v6 = vadd.f32 %v1086_v59, %v1050_v62  ;;  %v1119_v7 = vadd.f32 %v1087_v0, %v1051_v52 }
  0xc5   : > { %v952_v55 = vrot.slane %v3612_v43, 1  ;;  %v953_v8 = vrot.slane %v341_v60, 1  ;;  %v470_v9 = vand.u32 15, %v374_v4  ;;  %v477_v10 = vand.u32 15, %v375_v63 }
  0xc6   : > { %v897_v11 = vsel %vm4683_vm0, %v854_v28, %v855_v5  ;;  %v898_v12 = vsel %vm4683_vm0, %v853_v39, %v854_v28  ;;  %v1186_v13 = vadd.f32 %v1154_v2, %v1118_v6  ;;  %v1187_v19 = vadd.f32 %v1155_v3, %v1119_v7 }
  0xc7   : > { %v993_v22 = vsel %vm4678_vm1, %v952_v55, %v953_v8  ;;  %v994_v14 = vsel %vm4678_vm1, %v951_v46, %v952_v55  ;;  %2674 = vmatmul.mubr.bf16.gmra.mrb[4].mxu0 %v1213_v56  ;;  %vm3653_vm12 = vcmp.ne.s32.totalorder %v470_v9, 0  ;;  %vm3657_vm13 = vcmp.ne.s32.totalorder %v477_v10, 15  ;;  %v344_v55 = vld [vmem:[%s3416_s15 + $0x78] sm:$0xff] }
  0xc8   : > { %v4743_v31 = vmov 0  ;;  %v1053_v32 = vmul.f32 %v3479_v38, %v897_v11  ;;  %v1088_v15 = vmul.f32 %v3486_v41, %v339_v25  ;;  %v1214_v37 = vpack.c.bf16 %v1187_v19, %v1186_v13 }
  0xc9   : > { %v4744_v31 = vsel %vm3657_vm13, 4294967295, %v4743_v31  ;;  %v919_v39 = vsel %vm3653_vm12, %v898_v12, 0.0  ;;  %v1017_v18 = vsel %vm3657_vm13, %v993_v22, 0.0  ;;  %v1089_v26 = vmul.f32 %v3486_v41, %v3612_v43  ;;  %v345_v12 = vld [vmem:[%s3416_s15 + $0x80] sm:$0xff] }
  0xca   : > { %v1052_v45 = vmul.f32 %v3479_v38, %v919_v39  ;;  %v1156_v46 = vmul.f32 %v3488_v42, %v994_v14  ;;  %v1157_v47 = vmul.f32 %v3488_v42, %v1017_v18  ;;  %v376_v25 = vadd.s32 96, %v3430_v1  ;;  %2677 = vmatprep.mubr.bf16.mxu0 %v1214_v37 }
  0xcb   : > { %v1121_v48 = vadd.f32 %v1089_v26, %v1053_v32  ;;  %v377_v49 = vadd.s32 104, %v3430_v1  ;;  %v856_v50 = vrot.slane %v341_v60, 7  ;;  %v857_v51 = vrot.slane %v342_v36, 7 }
  0xcc   : > { %v1120_v52 = vadd.f32 %v1088_v15, %v1052_v45  ;;  %v484_v56 = vand.u32 15, %v376_v25  ;;  %v954_v57 = vrot.slane %v342_v36, 1  ;;  %v955_v43 = vrot.slane %v343_v40, 1 }
  0xcd   : > { %v1189_v58 = vadd.f32 %v1157_v47, %v1121_v48  ;;  %v491_v59 = vand.u32 15, %v377_v49  ;;  %v895_v62 = vsel %vm4683_vm0, %v856_v50, %v857_v51  ;;  %v896_v0 = vsel %vm4683_vm0, %v855_v5, %v856_v50 }
  0xce   : > { %v1188_v2 = vadd.f32 %v1156_v46, %v1120_v52  ;;  %vm3680_vm14 = vcmp.ne.s32.totalorder %v484_v56, 0  ;;  %v4745_v3 = vmov 0  ;;  %v991_v4 = vsel %vm4678_vm1, %v954_v57, %v955_v43 }
  0xcf   : > { %v4746_v3 = vsel %vm3680_vm14, 4294967295, %v4745_v3  ;;  %v992_v63 = vsel %vm4678_vm1, %v953_v8, %v954_v57  ;;  %vm3688_vm15 = vcmp.ne.s32.totalorder %v491_v59, 15  ;;  %v4747_v28 = vmov 0  ;;  %v346_v59 = vld [vmem:[%s3416_s15 + $0x88] sm:$0xff] }
  0xd0   : > { %v4748_v28 = vsel %vm3688_vm15, 4294967295, %v4747_v28  ;;  %v921_v6 = vsel %vm3680_vm14, %v896_v0, 0.0  ;;  %v1055_v5 = vmul.f32 %v3479_v38, %v895_v62  ;;  %v1090_v7 = vmul.f32 %v3486_v41, %v341_v60  ;;  %v347_v62 = vld [vmem:[%s3416_s15 + $0x90] sm:$0xff] }
  0xd1   : > { %v1215_v9 = vpack.c.bf16 %v1189_v58, %v1188_v2  ;;  %v1019_v10 = vsel %vm3688_vm15, %v991_v4, 0.0  ;;  %v1054_v11 = vmul.f32 %v3479_v38, %v921_v6  ;;  %v1091_v8 = vmul.f32 %v3486_v41, %v342_v36 }
  0xd2   : > { %v1158_v13 = vmul.f32 %v3488_v42, %v992_v63  ;;  %v1159_v19 = vmul.f32 %v3488_v42, %v1019_v10  ;;  %v378_v22 = vadd.s32 112, %v3430_v1  ;;  %v379_v14 = vadd.s32 120, %v3430_v1 }
  0xd3   : > { %2678 = vmatmul.mubr.bf16.gmra.mrb[8].mxu0 %v1215_v9  ;;  %v1122_v60 = vadd.f32 %v1090_v7, %v1054_v11  ;;  %v1123_v32 = vadd.f32 %v1091_v8, %v1055_v5  ;;  %v858_v15 = vrot.slane %v343_v40, 7  ;;  %v859_v37 = vrot.slane %v344_v55, 7 }
  0xd4   : > { %v498_v39 = vand.u32 15, %v378_v22  ;;  %v505_v18 = vand.u32 15, %v379_v14  ;;  %v956_v26 = vrot.slane %v344_v55, 1  ;;  %v957_v36 = vrot.slane %v345_v12, 1 }
  0xd5   : > { %v1190_v45 = vadd.f32 %v1158_v13, %v1122_v60  ;;  %v1191_v46 = vadd.f32 %v1159_v19, %v1123_v32  ;;  %v893_v47 = vsel %vm4683_vm0, %v858_v15, %v859_v37  ;;  %v894_v25 = vsel %vm4683_vm0, %v857_v51, %v858_v15 }
  0xd6   : > { %vm3710_vm1 = vcmp.ne.s32.totalorder %v498_v39, 0  ;;  %v4749_v48 = vmov 0  ;;  %vm3714_vm2 = vcmp.ne.s32.totalorder %v505_v18, 15  ;;  %v4751_v49 = vmov 0 }
  0xd7   : > { %v4750_v48 = vsel %vm3710_vm1, 4294967295, %v4749_v48  ;;  %v4752_v49 = vsel %vm3714_vm2, 4294967295, %v4751_v49  ;;  %vm4753_vm15 = vcmp.lt.s32.totalorder %v3430_v1, 7  ;;  %v1216_v56 = vpack.c.bf16 %v1191_v46, %v1190_v45 }
  0xd8   : > { %v989_v50 = vsel %vm4753_vm15, %v956_v26, %v957_v36  ;;  %vm4754_vm13 = vmmov %vm4753_vm15  ;;  %v923_v57 = vsel %vm3710_vm1, %v894_v25, 0.0  ;;  %v1057_v58 = vmul.f32 %v3479_v38, %v893_v47  ;;  %v1092_v2 = vmul.f32 %v3486_v41, %v343_v40 }
  0xd9   : > { %v990_v52 = vsel %vm4754_vm13, %v955_v43, %v956_v26  ;;  %v1021_v51 = vsel %vm3714_vm2, %v989_v50, 0.0  ;;  %v1056_v0 = vmul.f32 %v3479_v38, %v923_v57  ;;  %v1093_v4 = vmul.f32 %v3486_v41, %v344_v55  ;;  %2681 = vmatprep.mubr.bf16.mxu0 %v1216_v56  ;;  %v348_v26 = vld [vmem:[%s3416_s15 + $0x98] sm:$0xff]  ;;  %v349_v57 = vld [vmem:[%s3416_s15 + $0xa0] sm:$0xff] }
  0xda   : > { %v1160_v63 = vmul.f32 %v3488_v42, %v990_v52  ;;  %v1161_v43 = vmul.f32 %v3488_v42, %v1021_v51  ;;  %v380_v6 = vadd.s32 128, %v3430_v1  ;;  %v381_v5 = vadd.s32 136, %v3430_v1 }
  0xdb   : > { %v860_v7 = vrot.slane %v345_v12, 7  ;;  %v1124_v9 = vadd.f32 %v1092_v2, %v1056_v0  ;;  %v1125_v10 = vadd.f32 %v1093_v4, %v1057_v58  ;;  %v861_v11 = vrot.slane %v346_v59, 7 }
  0xdc   : > { %v862_v8 = vrot.slane %v347_v62, 7  ;;  %v512_v13 = vand.u32 15, %v380_v6  ;;  %v519_v19 = vand.u32 15, %v381_v5  ;;  %v958_v55 = vrot.slane %v346_v59, 1 }
  0xdd   : > { %v892_v40 = vsel %vm4683_vm0, %v859_v37, %v860_v7  ;;  %v1192_v22 = vadd.f32 %v1160_v63, %v1124_v9  ;;  %v1193_v14 = vadd.f32 %v1161_v43, %v1125_v10  ;;  %v891_v60 = vsel %vm4683_vm0, %v860_v7, %v861_v11 }
  0xde   : > { %v959_v32 = vrot.slane %v347_v62, 1  ;;  %vm3740_vm13 = vcmp.ne.s32.totalorder %v512_v13, 0  ;;  %v4755_v15 = vmov 0  ;;  %vm3744_vm15 = vcmp.ne.s32.totalorder %v519_v19, 15 }
  0xdf   : > { %v4756_v15 = vsel %vm3740_vm13, 4294967295, %v4755_v15  ;;  %v4757_v39 = vmov 0  ;;  %vm4759_vm2 = vcmp.lt.s32.totalorder %v3430_v1, 7  ;;  %v1059_v37 = vmul.f32 %v3479_v38, %v891_v60 }
  0xe0   : > { %v4758_v39 = vsel %vm3744_vm15, 4294967295, %v4757_v39  ;;  %v988_v18 = vsel %vm4759_vm2, %v957_v36, %v958_v55  ;;  %v1217_v45 = vpack.c.bf16 %v1193_v14, %v1192_v22  ;;  %v925_v46 = vsel %vm3740_vm13, %v892_v40, 0.0  ;;  %vm4760_vm0 = vmmov %vm4759_vm2  ;;  %v350_v22 = vld [vmem:[%s3416_s15 + $0xa8] sm:$0xff] }
  0xe1   : > { %v987_v47 = vsel %vm4760_vm0, %v958_v55, %v959_v32  ;;  %v1094_v25 = vmul.f32 %v3486_v41, %v345_v12  ;;  %v1058_v52 = vmul.f32 %v3479_v38, %v925_v46  ;;  %v1095_v56 = vmul.f32 %v3486_v41, %v346_v59 }
  0xe2   : > { %v1023_v50 = vsel %vm3744_vm15, %v987_v47, 0.0  ;;  %v1162_v36 = vmul.f32 %v3488_v42, %v988_v18  ;;  %2682 = vmatmul.mubr.bf16.gmra.mrb[12].mxu0 %v1217_v45  ;;  %v382_v58 = vadd.s32 144, %v3430_v1  ;;  %v383_v0 = vadd.s32 152, %v3430_v1 }
  0xe3   : > { %v1163_v51 = vmul.f32 %v3488_v42, %v1023_v50  ;;  %v863_v2 = vrot.slane %v348_v26, 7  ;;  %v1126_v4 = vadd.f32 %v1094_v25, %v1058_v52  ;;  %v1127_v12 = vadd.f32 %v1095_v56, %v1059_v37  ;;  %v3791_v37 = vld [vmem:[%s3416_s15 + $0xb0] sm:$0xff] }
  0xe4   : > { %vm4761_vm0 = vcmp.lt.s32.totalorder %v3430_v1, 1  ;;  %v960_v43 = vrot.slane %v348_v26, 1  ;;  %v526_v6 = vand.u32 15, %v382_v58  ;;  %v533_v59 = vand.u32 15, %v383_v0 }
  0xe5   : > { %v890_v63 = vsel %vm4761_vm0, %v861_v11, %v862_v8  ;;  %vm4762_vm2 = vmmov %vm4761_vm0  ;;  %v961_v7 = vrot.slane %v349_v57, 1  ;;  %v1194_v9 = vadd.f32 %v1162_v36, %v1126_v4  ;;  %v1195_v10 = vadd.f32 %v1163_v51, %v1127_v12 }
  0xe6   : > { %v889_v5 = vsel %vm4762_vm2, %v862_v8, %v863_v2  ;;  %vm4763_vm15 = vcmp.lt.s32.totalorder %v3430_v1, 7  ;;  %vm3773_vm13 = vcmp.ne.s32.totalorder %v526_v6, 0  ;;  %v4764_v40 = vmov 0 }
  0xe7   : > { %v986_v13 = vsel %vm4763_vm15, %v959_v32, %v960_v43  ;;  %v1061_v19 = vmul.f32 %v3479_v38, %v889_v5  ;;  %v4765_v40 = vsel %vm3773_vm13, 4294967295, %v4764_v40  ;;  %vm3777_vm0 = vcmp.ne.s32.totalorder %v533_v59, 15  ;;  %vm4768_vm1 = vmmov %vm4763_vm15 }
  0xe8   : > { %v4766_v11 = vmov 0  ;;  %v985_v55 = vsel %vm4768_vm1, %v960_v43, %v961_v7  ;;  %v1096_v8 = vmul.f32 %v3486_v41, %v347_v62  ;;  %v1218_v14 = vpack.c.bf16 %v1195_v10, %v1194_v9  ;;  %vm4769_vm1 = vmmov %vm4762_vm2 }
  0xe9   : > { %v4767_v11 = vsel %vm3777_vm0, 4294967295, %v4766_v11  ;;  %v927_v60 = vsel %vm3773_vm13, %v890_v63, 0.0  ;;  %v1025_v32 = vsel %vm3777_vm0, %v985_v55, 0.0  ;;  %v1097_v18 = vmul.f32 %v3486_v41, %v348_v26  ;;  %vm4770_vm15 = vmmov %vm4769_vm1 }
  0xea   : > { %v1060_v45 = vmul.f32 %v3479_v38, %v927_v60  ;;  %v1164_v46 = vmul.f32 %v3488_v42, %v986_v13  ;;  %v1165_v47 = vmul.f32 %v3488_v42, %v1025_v32  ;;  %v384_v62 = vadd.s32 160, %v3430_v1  ;;  %2685 = vmatprep.mubr.bf16.mxu1 %v1218_v14  ;;  %v3825_v60 = vld [vmem:[%s3416_s15 + $0xc0] sm:$0xff]  ;;  %v2915_v32 = vld [vmem:[#allocation8 + $0x8] sm:$0xff]  }
  0xeb   : > { %v1129_v25 = vadd.f32 %v1097_v18, %v1061_v19  ;;  %v385_v50 = vadd.s32 168, %v3430_v1  ;;  %v864_v52 = vrot.slane %v349_v57, 7  ;;  %v865_v56 = vrot.slane %v350_v22, 7  ;;  %v352_v19 = vld [vmem:[%s3416_s15 + $0xb8] sm:$0xff] }
  0xec   : > { %v1128_v36 = vadd.f32 %v1096_v8, %v1060_v45  ;;  %v540_v51 = vand.u32 15, %v384_v62  ;;  %v962_v26 = vrot.slane %v350_v22, 1  ;;  %v963_v58 = vrot.slane %v3791_v37, 1 }
  0xed   : > { %v1197_v0 = vadd.f32 %v1165_v47, %v1129_v25  ;;  %v547_v4 = vand.u32 15, %v385_v50  ;;  %v887_v12 = vsel %vm4769_vm1, %v864_v52, %v865_v56  ;;  %v888_v63 = vsel %vm4770_vm15, %v863_v2, %v864_v52 }
  0xee   : > { %v1196_v43 = vadd.f32 %v1164_v46, %v1128_v36  ;;  %vm3803_vm2 = vcmp.ne.s32.totalorder %v540_v51, 0  ;;  %v4771_v6 = vmov 0  ;;  %vm4773_vm0 = vcmp.lt.s32.totalorder %v3430_v1, 7 }
  0xef   : > { %v4772_v6 = vsel %vm3803_vm2, 4294967295, %v4771_v6  ;;  %v983_v59 = vsel %vm4773_vm0, %v962_v26, %v963_v58  ;;  %vm4774_vm13 = vmmov %vm4773_vm0  ;;  %vm3811_vm14 = vcmp.ne.s32.totalorder %v547_v4, 15  ;;  %v4775_v9 = vmov 0 }
  0xf0   : > { %v984_v5 = vsel %vm4774_vm13, %v961_v7, %v962_v26  ;;  %v4776_v9 = vsel %vm3811_vm14, 4294967295, %v4775_v9  ;;  %v929_v10 = vsel %vm3803_vm2, %v888_v63, 0.0  ;;  %v1063_v2 = vmul.f32 %v3479_v38, %v887_v12  ;;  %vm4777_vm13 = vmmov %vm4769_vm1  ;;  %v2916_v63 = vld [vmem:[#allocation8 + $0x10] sm:$0xff]  }
  0xf1   : > { %v1098_v13 = vmul.f32 %v3486_v41, %v349_v57  ;;  %v1219_v55 = vpack.c.bf16 %v1197_v0, %v1196_v43  ;;  %v1027_v8 = vsel %vm3811_vm14, %v983_v59, 0.0  ;;  %v1062_v14 = vmul.f32 %v3479_v38, %v929_v10  ;;  %vm4778_vm0 = vmmov %vm4769_vm1 }
  0xf2   : > { %v1099_v7 = vmul.f32 %v3486_v41, %v350_v22  ;;  %v1166_v18 = vmul.f32 %v3488_v42, %v984_v5  ;;  %v1167_v45 = vmul.f32 %v3488_v42, %v1027_v8  ;;  %v386_v46 = vadd.s32 176, %v3430_v1 }
  0xf3   : > { %v387_v57 = vadd.s32 184, %v3430_v1  ;;  %2686 = vmatmul.mubr.bf16.vlgmr.msra.gmra.mrb[0].mxu1 %v1219_v55  ;;  %v1130_v47 = vadd.f32 %v1098_v13, %v1062_v14  ;;  %v866_v25 = vrot.slane %v3791_v37, 7  ;;  %v867_v50 = vrot.slane %v352_v19, 7  ;;  %v354_v55 = vld [vmem:[%s3416_s15 + $0xc8] sm:$0xff] }
  0xf4   : > { %v1131_v62 = vadd.f32 %v1099_v7, %v1063_v2  ;;  %v554_v52 = vand.u32 15, %v386_v46  ;;  %v964_v22 = vrot.slane %v352_v19, 1  ;;  %v965_v51 = vrot.slane %v3825_v60, 1  ;;  %2702 = vmatpush3.bf16.msra.mxu1 %v3607_v33 }
  0xf5   : > { %v561_v36 = vand.u32 15, %v387_v57  ;;  %v1198_v26 = vadd.f32 %v1166_v18, %v1130_v47  ;;  %v885_v4 = vsel %vm4777_vm13, %v866_v25, %v867_v50  ;;  %v886_v12 = vsel %vm4778_vm0, %v865_v56, %v866_v25  ;;  %2703 = vmatprep.subr.bf16.mxu1 %v2915_v32 }
  0xf6   : > { %v1199_v0 = vadd.f32 %v1167_v45, %v1131_v62  ;;  %vm3838_vm1 = vcmp.ne.s32.totalorder %v554_v52, 0  ;;  %v4779_v43 = vmov 0  ;;  %v4781_v59 = vmov 0  ;;  %v2917_v62 = vld [vmem:[#allocation8 + $0x18] sm:$0xff]  }
  0xf7   : > { %v4780_v43 = vsel %vm3838_vm1, 4294967295, %v4779_v43  ;;  %vm3842_vm15 = vcmp.ne.s32.totalorder %v561_v36, 15  ;;  %vm4783_vm14 = vcmp.lt.s32.totalorder %v3430_v1, 7  ;;  %v931_v56 = vsel %vm3838_vm1, %v886_v12, 0.0 }
  0xf8   : > { %v4782_v59 = vsel %vm3842_vm15, 4294967295, %v4781_v59  ;;  %v981_v33 = vsel %vm4783_vm14, %v964_v22, %v965_v51  ;;  %vm4784_vm2 = vmmov %vm4783_vm14  ;;  %v1220_v10 = vpack.c.bf16 %v1199_v0, %v1198_v26  ;;  %v1065_v13 = vmul.f32 %v3479_v38, %v885_v4  ;;  %2704 = vmatpush3.bf16.msra.mxu1 %v2915_v32 }
  0xf9   : > { %v982_v5 = vsel %vm4784_vm2, %v963_v58, %v964_v22  ;;  %v1029_v2 = vsel %vm3842_vm15, %v981_v33, 0.0  ;;  %v1064_v8 = vmul.f32 %v3479_v38, %v931_v56  ;;  %v1100_v14 = vmul.f32 %v3486_v41, %v3791_v37  ;;  %v355_v58 = vld [vmem:[%s3416_s15 + $0xd0] sm:$0xff]  ;;  %2705 = vmatprep.subr.bf16.mxu1 %v2916_v63  ;;  %vm4785_vm14 = vmmov %vm4778_vm0 }
  0xfa   : > { %v1101_v7 = vmul.f32 %v3486_v41, %v352_v19  ;;  %v1168_v18 = vmul.f32 %v3488_v42, %v982_v5  ;;  %2689 = vmatprep.mubr.bf16.mxu1 %v1220_v10  ;;  %v1169_v45 = vmul.f32 %v3488_v42, %v1029_v2  ;;  %v388_v46 = vadd.s32 192, %v3430_v1  ;;  %vm4786_vm2 = vmmov %vm4778_vm0  ;;  %v356_v2 = vld [vmem:[%s3416_s15 + $0xd8] sm:$0xff] }
  0xfb   : > { %v389_v57 = vadd.s32 200, %v3430_v1  ;;  %v868_v47 = vrot.slane %v3825_v60, 7  ;;  %v1132_v25 = vadd.f32 %v1100_v14, %v1064_v8  ;;  %v869_v37 = vrot.slane %v354_v55, 7  ;;  %v357_v14 = vld [vmem:[%s3416_s15 + $0xe0] sm:$0xff] }
  0xfc   : > { %v1133_v52 = vadd.f32 %v1101_v7, %v1065_v13  ;;  %v966_v19 = vrot.slane %v354_v55, 1  ;;  %v568_v36 = vand.u32 15, %v388_v46  ;;  %v967_v26 = vrot.slane %v355_v58, 1  ;;  %2706 = vmatpush3.bf16.msra.mxu1 %v2916_v63  ;;  %v2918_v7 = vld [vmem:[#allocation8 + $0x20] sm:$0xff]  }
  0xfd   : > { %v575_v22 = vand.u32 15, %v389_v57  ;;  %v884_v32 = vsel %vm4785_vm14, %v867_v50, %v868_v47  ;;  %v1200_v0 = vadd.f32 %v1168_v18, %v1132_v25  ;;  %v883_v12 = vsel %vm4786_vm2, %v868_v47, %v869_v37  ;;  %2707 = vmatprep.subr.bf16.mxu1 %v2917_v62 }
  0xfe   : > { %v1201_v4 = vadd.f32 %v1169_v45, %v1133_v52  ;;  %vm4787_vm13 = vcmp.lt.s32.totalorder %v3430_v1, 7  ;;  %vm3872_vm0 = vcmp.ne.s32.totalorder %v568_v36, 0  ;;  %v4788_v5 = vmov 0 }
  0xff   : > { %v980_v33 = vsel %vm4787_vm13, %v965_v51, %v966_v19  ;;  %v4789_v5 = vsel %vm3872_vm0, 4294967295, %v4788_v5  ;;  %vm3876_vm15 = vcmp.ne.s32.totalorder %v575_v22, 15  ;;  %v4790_v10 = vmov 0  ;;  %vm4792_vm14 = vmmov %vm4787_vm13 }
 0x100   : > { %v4791_v10 = vsel %vm3876_vm15, 4294967295, %v4790_v10  ;;  %v979_v50 = vsel %vm4792_vm14, %v966_v19, %v967_v26  ;;  %v1067_v56 = vmul.f32 %v3479_v38, %v883_v12  ;;  %v1221_v13 = vpack.c.bf16 %v1201_v4, %v1200_v0  ;;  %2708 = vmatpush3.bf16.msra.mxu1 %v2917_v62  ;;  %vm4793_vm13 = vmmov %vm4786_vm2 }
 0x101   : > { %v933_v51 = vsel %vm3872_vm0, %v884_v32, 0.0  ;;  %v1031_v63 = vsel %vm3876_vm15, %v979_v50, 0.0  ;;  %v1102_v8 = vmul.f32 %v3486_v41, %v3825_v60  ;;  %v1103_v45 = vmul.f32 %v3486_v41, %v354_v55  ;;  %2709 = vmatprep.subr.bf16.mxu1 %v2918_v7  ;;  %vm4794_vm15 = vmmov %vm4792_vm14 }
 0x102   : > { %v1066_v18 = vmul.f32 %v3479_v38, %v933_v51  ;;  %v1170_v46 = vmul.f32 %v3488_v42, %v980_v33  ;;  %v1171_v57 = vmul.f32 %v3488_v42, %v1031_v63  ;;  %2690 = vmatmul.mubr.bf16.gmra.mrb[4].mxu1 %v1221_v13  ;;  %v390_v47 = vadd.s32 208, %v3430_v1 }
 0x103   : > { %v391_v25 = vadd.s32 216, %v3430_v1  ;;  %v870_v52 = vrot.slane %v355_v58, 7  ;;  %v871_v19 = vrot.slane %v356_v2, 7  ;;  %v1135_v22 = vadd.f32 %v1103_v45, %v1067_v56 }
 0x104   : > { %v1134_v36 = vadd.f32 %v1102_v8, %v1066_v18  ;;  %v968_v60 = vrot.slane %v356_v2, 1  ;;  %v969_v32 = vrot.slane %v357_v14, 1  ;;  %v582_v0 = vand.u32 15, %v390_v47  ;;  %v358_v8 = vld [vmem:[%s3416_s15 + $0xe8] sm:$0xff]  ;;  %2710 = vmatpush3.bf16.msra.mxu1 %v2918_v7 }
 0x105   : > { %v589_v4 = vand.u32 15, %v391_v25  ;;  %v881_v55 = vsel %vm4786_vm2, %v870_v52, %v871_v19  ;;  %v882_v12 = vsel %vm4793_vm13, %v869_v37, %v870_v52  ;;  %v1203_v50 = vadd.f32 %v1171_v57, %v1135_v22  ;;  %v359_v57 = vld [vmem:[%s3416_s15 + $0xf0] sm:$0xff] }
 0x106   : > { %v1202_v33 = vadd.f32 %v1170_v46, %v1134_v36  ;;  %v977_v13 = vsel %vm4792_vm14, %v968_v60, %v969_v32  ;;  %v978_v56 = vsel %vm4794_vm15, %v967_v26, %v968_v60  ;;  %vm3905_vm0 = vcmp.ne.s32.totalorder %v582_v0, 0  ;;  %vm4799_vm15 = vmmov %vm4786_vm2 }
 0x107   : > { %v4795_v62 = vmov 0  ;;  %vm3909_vm1 = vcmp.ne.s32.totalorder %v589_v4, 15  ;;  %v4797_v51 = vmov 0  ;;  %v1069_v63 = vmul.f32 %v3479_v38, %v881_v55 }
 0x108   : > { %v4796_v62 = vsel %vm3905_vm0, 4294967295, %v4795_v62  ;;  %v4798_v51 = vsel %vm3909_vm1, 4294967295, %v4797_v51  ;;  %v1104_v37 = vmul.f32 %v3486_v41, %v355_v58  ;;  %v1222_v18 = vpack.c.bf16 %v1203_v50, %v1202_v33 }
 0x109   : > { %v935_v45 = vsel %vm3905_vm0, %v882_v12, 0.0  ;;  %v1033_v26 = vsel %vm3909_vm1, %v977_v13, 0.0  ;;  %v1105_v46 = vmul.f32 %v3486_v41, %v356_v2  ;;  %v1172_v25 = vmul.f32 %v3488_v42, %v978_v56  ;;  %vm4802_vm1 = vmmov %vm4792_vm14 }
 0x10a   : > { %v1068_v47 = vmul.f32 %v3479_v38, %v935_v45  ;;  %v1173_v52 = vmul.f32 %v3488_v42, %v1033_v26  ;;  %v392_v58 = vadd.s32 224, %v3430_v1  ;;  %2693 = vmatprep.mubr.bf16.mxu1 %v1222_v18  ;;  %v393_v22 = vadd.s32 232, %v3430_v1 }
 0x10b   : > { %v1137_v36 = vadd.f32 %v1105_v46, %v1069_v63  ;;  %v872_v60 = vrot.slane %v357_v14, 7  ;;  %v873_v0 = vrot.slane %v358_v8, 7  ;;  %v970_v12 = vrot.slane %v358_v8, 1 }
 0x10c   : > { %v1136_v4 = vadd.f32 %v1104_v37, %v1068_v47  ;;  %v596_v55 = vand.u32 15, %v392_v58  ;;  %v971_v2 = vrot.slane %v359_v57, 1  ;;  %v603_v7 = vand.u32 15, %v393_v22 }
 0x10d   : > { %v1205_v33 = vadd.f32 %v1173_v52, %v1137_v36  ;;  %v879_v50 = vsel %vm4799_vm15, %v872_v60, %v873_v0  ;;  %v880_v13 = vsel %vm4786_vm2, %v871_v19, %v872_v60  ;;  %v4800_v18 = vmov 0 }
 0x10e   : > { %v1204_v56 = vadd.f32 %v1172_v25, %v1136_v4  ;;  %vm3931_vm13 = vcmp.ne.s32.totalorder %v596_v55, 0  ;;  %v975_v63 = vsel %vm4792_vm14, %v970_v12, %v971_v2  ;;  %v976_v37 = vsel %vm4802_vm1, %v969_v32, %v970_v12  ;;  %vm4806_vm1 = vmmov %vm4786_vm2 }
 0x10f   : > { %v4801_v18 = vsel %vm3931_vm13, 4294967295, %v4800_v18  ;;  %vm3939_vm0 = vcmp.ne.s32.totalorder %v603_v7, 15  ;;  %v4803_v45 = vmov 0  ;;  %v937_v26 = vsel %vm3931_vm13, %v880_v13, 0.0  ;;  %v2930_v13 = vld [vmem:[%s3416_s15 + $0xf8] sm:$0xff]  ;;  %vm4807_vm15 = vmmov %vm4806_vm1 }
 0x110   : > { %v4804_v45 = vsel %vm3939_vm0, 4294967295, %v4803_v45  ;;  %v1071_v19 = vmul.f32 %v3479_v38, %v879_v50  ;;  %v1106_v46 = vmul.f32 %v3486_v41, %v357_v14  ;;  %v1223_v47 = vpack.c.bf16 %v1205_v33, %v1204_v56 }
 0x111   : > { %4805 = vst [vmem:[#allocation16_spill] sm:$0xff] %v4804_v45  ;;  %v1035_v25 = vsel %vm3939_vm0, %v975_v63, 0.0  ;;  %v1070_v52 = vmul.f32 %v3479_v38, %v937_v26  ;;  %v1107_v32 = vmul.f32 %v3486_v41, %v358_v8  ;;  %v1174_v58 = vmul.f32 %v3488_v42, %v976_v37 }
 0x112   : > { %v1175_v36 = vmul.f32 %v3488_v42, %v1035_v25  ;;  %v394_v22 = vadd.s32 240, %v3430_v1  ;;  %v395_v60 = vadd.s32 248, %v3430_v1  ;;  %2694 = vmatmul.mubr.bf16.gmra.mrb[8].mxu1 %v1223_v47  ;;  %v874_v55 = vrot.slane %v359_v57, 7 }
 0x113   : > { %v1138_v4 = vadd.f32 %v1106_v46, %v1070_v52  ;;  %v1139_v14 = vadd.f32 %v1107_v32, %v1071_v19  ;;  %v972_v12 = vrot.slane %v3474_v29, 1  ;;  %v1108_v50 = vmul.f32 %v3486_v41, %v359_v57 }
 0x114   : > { %v610_v33 = vand.u32 15, %v394_v22  ;;  %v617_v7 = vand.u32 15, %v395_v60  ;;  %v1109_v8 = vmul.f32 %v2930_v13, %v3486_v41  ;;  %v877_v37 = vsel %vm4806_vm1, %v874_v55, %v875_v35  ;;  %v2919_v22 = vld [vmem:[#allocation8 + $0x28] sm:$0xff]   ;;  %v2920_v60 = vld [vmem:[#allocation8 + $0x30] sm:$0xff]  }
 0x115   : > { %v1206_v56 = vadd.f32 %v1174_v58, %v1138_v4  ;;  %v1207_v63 = vadd.f32 %v1175_v36, %v1139_v14  ;;  %v878_v26 = vsel %vm4807_vm15, %v873_v0, %v874_v55  ;;  %v4810_v46 = vmov 0  ;;  %2711 = vmatprep.subr.bf16.mxu1 %v2919_v22  ;;  %v2921_v4 = vld [vmem:[#allocation8 + $0x38] sm:$0xff]  }
 0x116   : > { %vm3965_vm2 = vcmp.ne.s32.totalorder %v610_v33, 0  ;;  %vm3969_vm14 = vcmp.ne.s32.totalorder %v617_v7, 15  ;;  %vm4813_vm0 = vcmp.lt.s32.totalorder %v3430_v1, 7  ;;  %v1073_v47 = vmul.f32 %v3479_v38, %v877_v37  ;;  %2712 = vmatpush3.bf16.msra.mxu1 %v2919_v22 }
 0x117   : > { %v4811_v46 = vsel %vm3969_vm14, 4294967295, %v4810_v46  ;;  %v974_v41 = vsel %vm4813_vm0, %v971_v2, %v972_v12  ;;  %vm4814_vm13 = vmmov %vm4813_vm0  ;;  %v1224_v35 = vpack.c.bf16 %v1207_v63, %v1206_v56  ;;  %v939_v57 = vsel %vm3965_vm2, %v878_v26, 0.0  ;;  %2713 = vmatprep.subr.bf16.mxu1 %v2920_v60 }
 0x118   : > { %4812 = vst [vmem:[#allocation17_spill] sm:$0xff] %v4811_v46  ;;  %v1005_v29 = vsel %vm4814_vm13, %v972_v12, %v941_v34  ;;  %v1072_v25 = vmul.f32 %v3479_v38, %v939_v57  ;;  %v1176_v52 = vmul.f32 %v3488_v42, %v974_v41  ;;  %v1141_v23 = vadd.f32 %v1109_v8, %v1073_v47  ;;  %v3990_v38 = vld [vmem:[%s4670_s2] ss:$0 sm:$0xff]  ;;  %vm4816_vm0 = vmmov %vm4806_vm1 }
 0x119   : > { %v1037_v0 = vsel %vm3969_vm14, %v1005_v29, 0.0  ;;  %2697 = vmatprep.mubr.bf16.mxu1 %v1224_v35  ;;  %vm4817_vm1 = vmmov %vm4816_vm0 }
 0x11a   : > { %v1177_v2 = vmul.f32 %v3488_v42, %v1037_v0  ;;  %v1140_v32 = vadd.f32 %v1108_v50, %v1072_v25  ;;  %2714 = vmatpush3.bf16.msra.mxu1 %v2920_v60  ;;  %vm4818_vm15 = vmmov %vm4816_vm0 }
 0x11b   : > { %2715 = vmatprep.subr.bf16.mxu1 %v2921_v4 }
 0x11c   : > { %v1209_v58 = vadd.f32 %v1177_v2, %v1141_v23  ;;  %v1208_v34 = vadd.f32 %v1176_v52, %v1140_v32 }
 0x11e   : > { %v1225_v36 = vpack.c.bf16 %v1209_v58, %v1208_v34  ;;  %2716 = vmatpush3.bf16.msra.mxu1 %v2921_v4 }
 0x120   : > { %2698 = vmatmul.mubr.bf16.gmra.mrb[12].mxu1 %v1225_v36 }
 0x192   : > { %v2671_v42 = vpop.f32.mrb[0].mxu0 }
 0x193   : > { %v1339_v14 = vadd.f32 %v2671_v42, %v3990_v38  ;;  %v1330_v55 = vpop.f32.mrb[1].mxu0 }
 0x194   : > { %v1331_v12 = vadd.f32 %v3990_v38, %v1330_v55  ;;  %v2672_v33 = vpop.f32.mrb[2].mxu0 }
 0x195   : > { %v1459_v7 = vmax.f32 %v1339_v14, 0.0  ;;  %v1342_v50 = vadd.f32 %v2672_v33, %v3990_v38  ;;  %v1333_v13 = vpop.f32.mrb[3].mxu0 }
 0x196   : > { %v1457_v8 = vmax.f32 %v1331_v12, 0.0  ;;  %v1334_v56 = vadd.f32 %v3990_v38, %v1333_v13 }
 0x197   : > { %v1460_v63 = vmax.f32 %v1342_v50, 0.0  ;;  %v1491_v26 = vmin.f32 %v1459_v7, 6.0 }
 0x198   : > { %v1458_v37 = vmax.f32 %v1334_v56, 0.0  ;;  %v1489_v29 = vmin.f32 %v1457_v8, 6.0 }
 0x199   : > { %v1492_v41 = vmin.f32 %v1460_v63, 6.0 }
 0x19a   : > { %v1490_v35 = vmin.f32 %v1458_v37, 6.0  ;;  %v2675_v57 = vpop.f32.mrb[4].mxu0 }
 0x19b   : > { %v1522_v0 = vpack.c.bf16 %v1492_v41, %v1491_v26  ;;  %v1355_v47 = vadd.f32 %v2675_v57, %v3990_v38  ;;  %v1346_v25 = vpop.f32.mrb[5].mxu0 }
 0x19c   : > { %v1521_v52 = vpack.c.bf16 %v1490_v35, %v1489_v29  ;;  %v1347_v2 = vadd.f32 %v3990_v38, %v1346_v25  ;;  %v2676_v23 = vpop.f32.mrb[6].mxu0 }
 0x19d   : > { %v1463_v32 = vmax.f32 %v1355_v47, 0.0  ;;  %v1358_v58 = vadd.f32 %v2676_v23, %v3990_v38  ;;  %v1349_v34 = vpop.f32.mrb[7].mxu0 }
 0x19e   : > { %v1461_v36 = vmax.f32 %v1347_v2, 0.0  ;;  %v1350_v22 = vadd.f32 %v3990_v38, %v1349_v34  ;;  %2717 = vmatprep.mubr.bf16.mxu1 %v1521_v52 }
 0x19f   : > { %v1464_v60 = vmax.f32 %v1358_v58, 0.0  ;;  %2718 = vmatmul.mubr.bf16.vlgmr.msra.gmra.mrb[16].mxu1 %v1522_v0  ;;  %v1495_v42 = vmin.f32 %v1463_v32, 6.0 }
 0x1a0   : > { %v1462_v4 = vmax.f32 %v1350_v22, 0.0  ;;  %v1493_v55 = vmin.f32 %v1461_v36, 6.0 }
 0x1a1   : > { %v1496_v14 = vmin.f32 %v1464_v60, 6.0 }
 0x1a2   : > { %v1494_v12 = vmin.f32 %v1462_v4, 6.0 }
 0x1a3   : > { %v1524_v33 = vpack.c.bf16 %v1496_v14, %v1495_v42 }
 0x1a4   : > { %v1523_v7 = vpack.c.bf16 %v1494_v12, %v1493_v55 }
 0x1a6   : > { %v2679_v50 = vpop.f32.mrb[8].mxu0  ;;  %2721 = vmatprep.mubr.bf16.mxu1 %v1523_v7 }
 0x1a7   : > { %v1371_v13 = vadd.f32 %v2679_v50, %v3990_v38  ;;  %v1362_v8 = vpop.f32.mrb[9].mxu0  ;;  %2722 = vmatmul.mubr.bf16.gmra.mrb[20].mxu1 %v1524_v33 }
 0x1a8   : > { %v1363_v56 = vadd.f32 %v3990_v38, %v1362_v8  ;;  %v2680_v63 = vpop.f32.mrb[10].mxu0 }
 0x1a9   : > { %v1467_v37 = vmax.f32 %v1371_v13, 0.0  ;;  %v1374_v26 = vadd.f32 %v2680_v63, %v3990_v38  ;;  %v1365_v41 = vpop.f32.mrb[11].mxu0 }
 0x1aa   : > { %v1465_v29 = vmax.f32 %v1363_v56, 0.0  ;;  %v1366_v35 = vadd.f32 %v3990_v38, %v1365_v41 }
 0x1ab   : > { %v1468_v57 = vmax.f32 %v1374_v26, 0.0  ;;  %v1499_v47 = vmin.f32 %v1467_v37, 6.0 }
 0x1ac   : > { %v1466_v0 = vmax.f32 %v1366_v35, 0.0  ;;  %v1497_v52 = vmin.f32 %v1465_v29, 6.0 }
 0x1ad   : > { %v1500_v25 = vmin.f32 %v1468_v57, 6.0 }
 0x1ae   : > { %v1498_v2 = vmin.f32 %v1466_v0, 6.0 }
 0x1af   : > { %v1526_v23 = vpack.c.bf16 %v1500_v25, %v1499_v47 }
 0x1b0   : > { %v1525_v32 = vpack.c.bf16 %v1498_v2, %v1497_v52 }
 0x1b2   : > { %2725 = vmatprep.mubr.bf16.mxu1 %v1525_v32 }
 0x1b3   : > { %2726 = vmatmul.mubr.bf16.gmra.mrb[24].mxu1 %v1526_v23 }
 0x1b5   : > { %v2683_v58 = vpop.f32.mrb[12].mxu0 }
 0x1b6   : > { %v1387_v34 = vadd.f32 %v2683_v58, %v3990_v38  ;;  %v1378_v36 = vpop.f32.mrb[13].mxu0 }
 0x1b7   : > { %v1379_v22 = vadd.f32 %v3990_v38, %v1378_v36  ;;  %v2684_v60 = vpop.f32.mrb[14].mxu0 }
 0x1b8   : > { %v1471_v4 = vmax.f32 %v1387_v34, 0.0  ;;  %v1390_v42 = vadd.f32 %v2684_v60, %v3990_v38  ;;  %v1381_v14 = vpop.f32.mrb[15].mxu0 }
 0x1b9   : > { %v1469_v55 = vmax.f32 %v1379_v22, 0.0  ;;  %v1382_v12 = vadd.f32 %v3990_v38, %v1381_v14 }
 0x1ba   : > { %v1472_v33 = vmax.f32 %v1390_v42, 0.0  ;;  %v1503_v50 = vmin.f32 %v1471_v4, 6.0 }
 0x1bb   : > { %v1470_v7 = vmax.f32 %v1382_v12, 0.0  ;;  %v1501_v8 = vmin.f32 %v1469_v55, 6.0 }
 0x1bc   : > { %v1504_v13 = vmin.f32 %v1472_v33, 6.0 }
 0x1bd   : > { %v1502_v56 = vmin.f32 %v1470_v7, 6.0 }
 0x1be   : > { %v1528_v63 = vpack.c.bf16 %v1504_v13, %v1503_v50 }
 0x1bf   : > { %v1527_v37 = vpack.c.bf16 %v1502_v56, %v1501_v8 }
 0x1c1   : > { %2729 = vmatprep.mubr.bf16.mxu1 %v1527_v37 }
 0x1c2   : > { %2730 = vmatmul.mubr.bf16.gmra.mrb[28].mxu1 %v1528_v63 }
 0x1c6   : > { %v2687_v26 = vpop.f32.mrb[0].mxu1 }
 0x1c7   : > { %v1403_v41 = vadd.f32 %v2687_v26, %v3990_v38  ;;  %v1394_v29 = vpop.f32.mrb[1].mxu1 }
 0x1c8   : > { %v1395_v35 = vadd.f32 %v3990_v38, %v1394_v29  ;;  %v2688_v57 = vpop.f32.mrb[2].mxu1 }
 0x1c9   : > { %v1475_v0 = vmax.f32 %v1403_v41, 0.0  ;;  %v1406_v47 = vadd.f32 %v2688_v57, %v3990_v38  ;;  %v1397_v25 = vpop.f32.mrb[3].mxu1 }
 0x1ca   : > { %v1473_v52 = vmax.f32 %v1395_v35, 0.0  ;;  %v1398_v2 = vadd.f32 %v3990_v38, %v1397_v25 }
 0x1cb   : > { %v1507_v23 = vmin.f32 %v1475_v0, 6.0  ;;  %v1476_v32 = vmax.f32 %v1406_v47, 0.0 }
 0x1cc   : > { %v1505_v58 = vmin.f32 %v1473_v52, 6.0  ;;  %v1474_v34 = vmax.f32 %v1398_v2, 0.0 }
 0x1cd   : > { %v1508_v36 = vmin.f32 %v1476_v32, 6.0 }
 0x1ce   : > { %v1506_v22 = vmin.f32 %v1474_v34, 6.0 }
 0x1cf   : > { %v1530_v60 = vpack.c.bf16 %v1508_v36, %v1507_v23 }
 0x1d0   : > { %v1529_v4 = vpack.c.bf16 %v1506_v22, %v1505_v58 }
 0x1d2   : > { %2733 = vmatprep.mubr.bf16.mxu1 %v1529_v4 }
 0x1d3   : > { %2734 = vmatmul.mubr.bf16.gmra.mrb[32].mxu1 %v1530_v60 }
 0x1d5   : > { %v2691_v42 = vpop.f32.mrb[4].mxu1 }
 0x1d6   : > { %v1419_v14 = vadd.f32 %v2691_v42, %v3990_v38  ;;  %v1410_v55 = vpop.f32.mrb[5].mxu1 }
 0x1d7   : > { %v1411_v12 = vadd.f32 %v3990_v38, %v1410_v55  ;;  %v2692_v33 = vpop.f32.mrb[6].mxu1 }
 0x1d8   : > { %v1479_v7 = vmax.f32 %v1419_v14, 0.0  ;;  %v1422_v50 = vadd.f32 %v2692_v33, %v3990_v38  ;;  %v1413_v13 = vpop.f32.mrb[7].mxu1 }
 0x1d9   : > { %v1477_v8 = vmax.f32 %v1411_v12, 0.0  ;;  %v1414_v56 = vadd.f32 %v3990_v38, %v1413_v13 }
 0x1da   : > { %v1511_v63 = vmin.f32 %v1479_v7, 6.0  ;;  %v1480_v37 = vmax.f32 %v1422_v50, 0.0 }
 0x1db   : > { %v1509_v26 = vmin.f32 %v1477_v8, 6.0  ;;  %v1478_v41 = vmax.f32 %v1414_v56, 0.0 }
 0x1dc   : > { %v1512_v29 = vmin.f32 %v1480_v37, 6.0 }
 0x1dd   : > { %v1510_v35 = vmin.f32 %v1478_v41, 6.0 }
 0x1de   : > { %v1532_v57 = vpack.c.bf16 %v1512_v29, %v1511_v63 }
 0x1df   : > { %v1531_v0 = vpack.c.bf16 %v1510_v35, %v1509_v26 }
 0x1e1   : > { %2737 = vmatprep.mubr.bf16.mxu1 %v1531_v0 }
 0x1e2   : > { %2738 = vmatmul.mubr.bf16.gmra.mrb[36].mxu1 %v1532_v57 }
 0x1e5   : > { %v2695_v47 = vpop.f32.mrb[8].mxu1 }
 0x1e6   : > { %v1435_v25 = vadd.f32 %v2695_v47, %v3990_v38  ;;  %v1426_v52 = vpop.f32.mrb[9].mxu1 }
 0x1e7   : > { %v1427_v2 = vadd.f32 %v3990_v38, %v1426_v52  ;;  %v2696_v23 = vpop.f32.mrb[10].mxu1 }
 0x1e8   : > { %v1483_v32 = vmax.f32 %v1435_v25, 0.0  ;;  %v1438_v58 = vadd.f32 %v2696_v23, %v3990_v38  ;;  %v1429_v34 = vpop.f32.mrb[11].mxu1 }
 0x1e9   : > { %v1481_v36 = vmax.f32 %v1427_v2, 0.0  ;;  %v1430_v22 = vadd.f32 %v3990_v38, %v1429_v34  ;;  %v2923_v34 = vld [vmem:[#allocation10 + $0x8] sm:$0xff]  }
 0x1ea   : > { %v1515_v60 = vmin.f32 %v1483_v32, 6.0  ;;  %v1484_v4 = vmax.f32 %v1438_v58, 0.0  ;;  %v2922_v58 = vld [vmem:[#allocation10] sm:$0xff]  }
 0x1eb   : > { %v1513_v42 = vmin.f32 %v1481_v36, 6.0  ;;  %v1482_v14 = vmax.f32 %v1430_v22, 0.0  ;;  %2749 = vmatprep.subr.bf16.mxu0 %v2922_v58  ;;  %v2924_v36 = vld [vmem:[#allocation10 + $0x10] sm:$0xff]   ;;  %v2926_v22 = vld [vmem:[#allocation10 + $0x20] sm:$0xff]  }
 0x1ec   : > { %v1516_v55 = vmin.f32 %v1484_v4, 6.0  ;;  %2750 = vmatpush3.bf16.msra.mxu0 %v2922_v58  ;;  %v2928_v4 = vld [vmem:[#allocation10 + $0x30] sm:$0xff]  }
 0x1ed   : > { %v1514_v12 = vmin.f32 %v1482_v14, 6.0  ;;  %2751 = vmatprep.subr.bf16.mxu0 %v2923_v34  ;;  %v1555_v14 = vsub.s32 6, %v3430_v1 }
 0x1ee   : > { %v1534_v33 = vpack.c.bf16 %v1516_v55, %v1515_v60  ;;  %v2927_v60 = vld [vmem:[#allocation10 + $0x28] sm:$0xff]   ;;  %v4025_v55 = vld [vmem:[#allocation5] sm:$0xff] }
 0x1ef   : > { %v1533_v7 = vpack.c.bf16 %v1514_v12, %v1513_v42  ;;  %v2929_v42 = vld [vmem:[#allocation10 + $0x38] sm:$0xff]   ;;  %4815 = vst [vmem:[#allocation18_spill] sm:$0xff] %v4025_v55  ;;  %v4028_v12 = vrot.slane %v4025_v55, %v1555_v14 }
 0x1f0   : > { %2752 = vmatpush3.bf16.msra.mxu0 %v2923_v34 }
 0x1f1   : > { %2741 = vmatprep.mubr.bf16.mxu1 %v1533_v7  ;;  %2753 = vmatprep.subr.bf16.mxu0 %v2924_v36 }
 0x1f2   : > { %2742 = vmatmul.mubr.bf16.gmra.mrb[40].mxu1 %v1534_v33  ;;  %v1996_v33 = vsub.s32 4, %v3430_v1 }
 0x1f3   : > { %v2699_v50 = vpop.f32.mrb[12].mxu1 }
 0x1f4   : > { %v1451_v13 = vadd.f32 %v2699_v50, %v3990_v38  ;;  %v1442_v8 = vpop.f32.mrb[13].mxu1  ;;  %2754 = vmatpush3.bf16.msra.mxu0 %v2924_v36  ;;  %v1960_v50 = vsub.s32 3, %v3430_v1 }
 0x1f5   : > { %v1443_v56 = vadd.f32 %v3990_v38, %v1442_v8  ;;  %v2700_v63 = vpop.f32.mrb[14].mxu1 }
 0x1f6   : > { %v1487_v37 = vmax.f32 %v1451_v13, 0.0  ;;  %v1454_v26 = vadd.f32 %v2700_v63, %v3990_v38  ;;  %v1445_v41 = vpop.f32.mrb[15].mxu1  ;;  %v2064_v13 = vsub.s32 5, %v3430_v1  ;;  %v4035_v63 = vrot.slane %v4025_v55, %v1996_v33 }
 0x1f7   : > { %v1485_v29 = vmax.f32 %v1443_v56, 0.0  ;;  %v1446_v35 = vadd.f32 %v3990_v38, %v1445_v41  ;;  %v2925_v38 = vld [vmem:[#allocation10 + $0x18] sm:$0xff]  }
 0x1f8   : > { %v1519_v57 = vmin.f32 %v1487_v37, 6.0  ;;  %v1488_v0 = vmax.f32 %v1454_v26, 0.0  ;;  %2755 = vmatprep.subr.bf16.mxu0 %v2925_v38 }
 0x1f9   : > { %v1517_v47 = vmin.f32 %v1485_v29, 6.0  ;;  %v1486_v25 = vmax.f32 %v1446_v35, 0.0  ;;  %2756 = vmatpush3.bf16.msra.mxu0 %v2925_v38  ;;  %v4042_v35 = vrot.slane %v4025_v55, %v1960_v50 }
 0x1fa   : > { %v1520_v52 = vmin.f32 %v1488_v0, 6.0  ;;  %2757 = vmatprep.subr.bf16.mxu0 %v2926_v22 }
 0x1fb   : > { %v1518_v2 = vmin.f32 %v1486_v25, 6.0 }
 0x1fc   : > { %v1536_v23 = vpack.c.bf16 %v1520_v52, %v1519_v57  ;;  %v4045_v57 = vrot.slane %v4025_v55, %v2064_v13 }
 0x1fd   : > { %v1535_v32 = vpack.c.bf16 %v1518_v2, %v1517_v47  ;;  %2758 = vmatpush3.bf16.msra.mxu0 %v2926_v22 }
 0x1fe   : > { %2759 = vmatprep.subr.bf16.mxu0 %v2927_v60 }
 0x1ff   : > { %2745 = vmatprep.mubr.bf16.mxu1 %v1535_v32 }
 0x200   : > { %2746 = vmatmul.mubr.bf16.gmra.mrb[44].mxu1 %v1536_v23 }
 0x201   : > { %2760 = vmatpush3.bf16.msra.mxu0 %v2927_v60 }
 0x202   : > { %2761 = vmatprep.subr.bf16.mxu0 %v2928_v4 }
 0x205   : > { %2762 = vmatpush3.bf16.msra.mxu0 %v2928_v4 }
 0x206   : > { %2763 = vmatprep.subr.bf16.mxu0 %v2929_v42 }
 0x209   : > { %2764 = vmatpush3.bf16.msra.mxu0 %v2929_v42 }
 0x272   : > { %v2719_v7 = vpop.f32.mrb[16].mxu1 }
 0x273   : > { %v1648_v8 = vadd.f32 %v2719_v7, %v4028_v12  ;;  %v1639_v56 = vpop.f32.mrb[17].mxu1 }
 0x274   : > { %v4038_v37 = vadd.f32 %v1639_v56, %v4028_v12  ;;  %v2720_v26 = vpop.f32.mrb[18].mxu1 }
 0x275   : > { %v1651_v41 = vadd.f32 %v2720_v26, %v4028_v12  ;;  %v1642_v29 = vpop.f32.mrb[19].mxu1  ;;  %v1768_v47 = vrot.slane %v1648_v8, 7  ;;  %v1864_v25 = vrot.slane %v1648_v8, 1  ;;  %v2000_v23 = vmul.f32 %v4035_v63, %v1648_v8 }
 0x276   : > { %v1643_v0 = vadd.f32 %v1642_v29, %v4028_v12  ;;  %v4701_v32 = vrot.slane %v4038_v37, 7  ;;  %v4700_v36 = vrot.slane %v4038_v37, 1 }
 0x277   : > { %v1769_v52 = vrot.slane %v1651_v41, 7  ;;  %v1865_v2 = vrot.slane %v1651_v41, 1  ;;  %v2001_v60 = vmul.f32 %v4035_v63, %v1651_v41 }
 0x278   : > { %v1767_v58 = vrot.slane %v1643_v0, 7  ;;  %v1863_v34 = vrot.slane %v1643_v0, 1  ;;  %v1999_v33 = vmul.f32 %v4035_v63, %v1643_v0 }
 0x279   : > { %v1826_v38 = vsel %vm4816_vm0, %v1768_v47, %v1769_v52  ;;  %v1922_v22 = vsel %vm4814_vm13, %v1864_v25, %v1865_v2  ;;  %vm4819_vm0 = vmmov %vm4814_vm13 }
 0x27a   : > { %v1965_v4 = vmul.f32 %v4042_v35, %v1826_v38  ;;  %v1827_v42 = vsel %vm4817_vm1, %v1767_v58, %v1768_v47  ;;  %v1828_v14 = vsel %vm4818_vm15, %v4701_v32, %v1767_v58  ;;  %v2723_v7 = vpop.f32.mrb[20].mxu1  ;;  %v1923_v13 = vsel %vm4819_vm0, %v1863_v34, %v1864_v25  ;;  %vm4821_vm13 = vmmov %vm4817_vm1 }
 0x27b   : > { %v1832_v50 = vsel %vm3453_vm4, %v1827_v42, 0.0  ;;  %v1963_v8 = vmul.f32 %v4042_v35, %v1828_v14  ;;  %v4070_v56 = vadd.f32 %v2723_v7, %v4028_v12  ;;  %v1655_v26 = vpop.f32.mrb[21].mxu1  ;;  %vm4820_vm4 = vmmov %vm4819_vm0  ;;  %v2068_v25 = vmul.f32 %v4045_v57, %v1922_v22 }
 0x27c   : > { %v2033_v41 = vadd.f32 %v2001_v60, %v1965_v4  ;;  %v1964_v29 = vmul.f32 %v4042_v35, %v1832_v50  ;;  %v4074_v47 = vadd.f32 %v1655_v26, %v4028_v12  ;;  %v2724_v0 = vpop.f32.mrb[22].mxu1  ;;  %v4080_v20 = vsel %vm4820_vm4, %v4700_v36, %v1863_v34  ;;  %vm4822_vm1 = vmmov %vm4819_vm0 }
 0x27d   : > { %v2031_v58 = vadd.f32 %v1999_v33, %v1963_v8  ;;  %v1772_v38 = vrot.slane %v4070_v56, 7  ;;  %v1658_v60 = vpop.f32.mrb[23].mxu1  ;;  %v4087_v14 = vmul.f32 %v4035_v63, %v4070_v56  ;;  %v4094_v22 = vadd.f32 %v2724_v0, %v4028_v12  ;;  %vm4830_vm15 = vmmov %vm4819_vm0 }
 0x27e   : > { %v2032_v4 = vadd.f32 %v2000_v23, %v1964_v29  ;;  %v1770_v7 = vrot.slane %v4074_v47, 7  ;;  %v1866_v50 = vrot.slane %v4074_v47, 1  ;;  %v2002_v34 = vmul.f32 %v4035_v63, %v4074_v47  ;;  %vm4832_vm4 = vmmov %vm4819_vm0 }
 0x27f   : > { %v1659_v33 = vadd.f32 %v1658_v60, %v4028_v12  ;;  %v1927_v8 = vsel %vm3446_vm3, %v1923_v13, 0.0  ;;  %v1773_v60 = vrot.slane %v4094_v22, 7  ;;  %v1869_v17 = vrot.slane %v4094_v22, 1  ;;  %vm4824_vm3 = vmmov %vm4821_vm13 }
 0x280   : > { %v1825_v23 = vsel %vm4821_vm13, %v1769_v52, %v1770_v7  ;;  %v1921_v26 = vsel %vm4822_vm1, %v1865_v2, %v1866_v50  ;;  %v2067_v29 = vmul.f32 %v4045_v57, %v1927_v8  ;;  %v4104_v36 = vadd.f32 %v2068_v25, %v2032_v4  ;;  %vm4833_vm13 = vmmov %vm4824_vm3 }
 0x281   : > { %v1834_v47 = vsel %vm3491_vm6, %v1825_v23, 0.0  ;;  %v1929_v0 = vsel %vm3457_vm5, %v1921_v26, 0.0  ;;  %v2005_v2 = vmul.f32 %v4035_v63, %v4094_v22  ;;  %v1771_v8 = vrot.slane %v1659_v33, 7  ;;  %vm4827_vm5 = vmmov %vm4824_vm3 }
 0x282   : > { %4823 = vst [vmem:[#allocation19_spill] sm:$0xff] %v4104_v36  ;;  %v1966_v13 = vmul.f32 %v4042_v35, %v1834_v47  ;;  %v2069_v52 = vmul.f32 %v4045_v57, %v1929_v0  ;;  %v1822_v25 = vsel %vm4824_vm3, %v1772_v38, %v1773_v60  ;;  %v1867_v44 = vrot.slane %v1659_v33, 1  ;;  %vm4828_vm6 = vmmov %vm4824_vm3 }
 0x283   : > { %v2003_v4 = vmul.f32 %v4035_v63, %v1659_v33  ;;  %v4119_v21 = vadd.f32 %v2067_v29, %v2031_v58  ;;  %v1969_v32 = vmul.f32 %v4042_v35, %v1822_v25  ;;  %v1823_v47 = vsel %vm4827_vm5, %v1771_v8, %v1772_v38  ;;  %vm4834_vm1 = vmmov %vm4824_vm3 }
 0x284   : > { %v2034_v23 = vadd.f32 %v2002_v34, %v1966_v13  ;;  %v4121_v26 = vadd.f32 %v2069_v52, %v2033_v41  ;;  %v1824_v22 = vsel %vm4828_vm6, %v1770_v7, %v1771_v8  ;;  %v1836_v42 = vsel %vm3575_vm8, %v1823_v47, 0.0  ;;  %vm4831_vm8 = vmmov %vm4824_vm3 }
 0x285   : > { %4825 = vst [vmem:[#allocation20_spill] sm:$0xff] %v4119_v21  ;;  %v4829_v55 = vrot.slane %v4070_v56, 1  ;;  %v2037_v33 = vadd.f32 %v2005_v2, %v1969_v32  ;;  %v1967_v29 = vmul.f32 %v4042_v35, %v1824_v22  ;;  %vm4838_vm3 = vmmov %vm4819_vm0  ;;  %vm4843_vm6 = vnez %v4746_v3 }
 0x286   : > { %4826 = vst [vmem:[#allocation21_spill] sm:$0xff] %v4121_v26  ;;  %v2727_v0 = vpop.f32.mrb[24].mxu1  ;;  %vm4840_vm5 = vmmov %vm4819_vm0 }
 0x287   : > { %v1919_v58 = vsel %vm4830_vm15, %v1867_v44, %v4829_v55  ;;  %v1680_v41 = vadd.f32 %v2727_v0, %v4028_v12  ;;  %v1671_v34 = vpop.f32.mrb[25].mxu1  ;;  %v2035_v47 = vadd.f32 %v2003_v4, %v1967_v29  ;;  %v1920_v4 = vsel %vm4832_vm4, %v1866_v50, %v1867_v44  ;;  %vm4844_vm15 = vmmov %vm4834_vm1 }
 0x288   : > { %v1672_v38 = vadd.f32 %v1671_v34, %v4028_v12  ;;  %v2728_v13 = vpop.f32.mrb[26].mxu1  ;;  %v1931_v29 = vsel %vm3541_vm7, %v1919_v58, 0.0  ;;  %v2070_v45 = vmul.f32 %v4045_v57, %v1920_v4  ;;  %vm4835_vm7 = vmmov %vm4834_vm1  ;;  %vm4847_vm4 = vnez %v4750_v48 }
 0x289   : > { %v1776_v52 = vrot.slane %v1680_v41, 7  ;;  %v1872_v61 = vrot.slane %v1680_v41, 1  ;;  %v4140_v8 = vmul.f32 %v4035_v63, %v1680_v41  ;;  %v4143_v25 = vadd.f32 %v2728_v13, %v4028_v12  ;;  %v1674_v55 = vpop.f32.mrb[27].mxu1 }
 0x28a   : > { %v1774_v0 = vrot.slane %v1672_v38, 7  ;;  %v1870_v32 = vrot.slane %v1672_v38, 1  ;;  %v2006_v2 = vmul.f32 %v4035_v63, %v1672_v38  ;;  %v1675_v36 = vadd.f32 %v1674_v55, %v4028_v12 }
 0x28b   : > { %v1777_v22 = vrot.slane %v4143_v25, 7  ;;  %v1873_v34 = vrot.slane %v4143_v25, 1  ;;  %v2009_v7 = vmul.f32 %v4035_v63, %v4143_v25  ;;  %v2071_v44 = vmul.f32 %v4045_v57, %v1931_v29 }
 0x28c   : > { %v1821_v41 = vsel %vm4831_vm8, %v1773_v60, %v1774_v0  ;;  %v1917_v13 = vsel %vm4819_vm0, %v1869_v17, %v1870_v32  ;;  %v1775_v26 = vrot.slane %v1675_v36, 7  ;;  %v1871_v55 = vrot.slane %v1675_v36, 1  ;;  %vm4845_vm8 = vmmov %vm4834_vm1 }
 0x28d   : > { %v1838_v38 = vsel %vm3618_vm10, %v1821_v41, 0.0  ;;  %v1818_v25 = vsel %vm4833_vm13, %v1776_v52, %v1777_v22  ;;  %v2007_v46 = vmul.f32 %v4035_v63, %v1675_v36  ;;  %vm4836_vm10 = vmmov %vm4819_vm0  ;;  %v4179_v4 = vadd.f32 %v2070_v45, %v2034_v23 }
 0x28e   : > { %v1970_v21 = vmul.f32 %v4042_v35, %v1838_v38  ;;  %v1973_v60 = vmul.f32 %v4042_v35, %v1818_v25  ;;  %v1819_v24 = vsel %vm4834_vm1, %v1775_v26, %v1776_v52  ;;  %v1820_v53 = vsel %vm4835_vm7, %v1774_v0, %v1775_v26  ;;  %vm4848_vm13 = vmmov %vm4838_vm3 }
 0x28f   : > { %v1915_v50 = vsel %vm4836_vm10, %v1871_v55, %v1872_v61  ;;  %v1840_v38 = vsel %vm3653_vm12, %v1819_v24, 0.0  ;;  %v1971_v36 = vmul.f32 %v4042_v35, %v1820_v53  ;;  %v4181_v25 = vadd.f32 %v2071_v44, %v2035_v47  ;;  %vm4839_vm12 = vmmov %vm4819_vm0 }
 0x290   : > { %v2038_v58 = vadd.f32 %v2006_v2, %v1970_v21  ;;  %v4174_v41 = vadd.f32 %v2009_v7, %v1973_v60  ;;  %v4837_v52 = vrot.slane %v4070_v56, 1  ;;  %v1933_v0 = vsel %vm3579_vm9, %v1917_v13, 0.0  ;;  %vm4841_vm9 = vmmov %vm4834_vm1 }
 0x291   : > { %v2039_v21 = vadd.f32 %v2007_v46, %v1971_v36  ;;  %v1968_v7 = vmul.f32 %v4042_v35, %v1836_v42  ;;  %v2073_v2 = vmul.f32 %v4045_v57, %v1933_v0  ;;  %v2132_v45 = vpack.c.bf16 %v4181_v25, %v4179_v4  ;;  %vm4850_vm7 = vmmov %vm4838_vm3 }
 0x292   : > { %v1918_v26 = vsel %vm4838_vm3, %v4837_v52, %v1869_v17  ;;  %v1916_v56 = vsel %vm4839_vm12, %v1870_v32, %v1871_v55  ;;  %v1935_v17 = vsel %vm3622_vm11, %v1915_v50, 0.0  ;;  %v1914_v27 = vsel %vm4840_vm5, %v1872_v61, %v1873_v34  ;;  %vm4842_vm11 = vmmov %vm4819_vm0 }
 0x293   : > { %v2072_v30 = vmul.f32 %v4045_v57, %v1918_v26  ;;  %v2036_v23 = vadd.f32 %v4087_v14, %v1968_v7  ;;  %v4202_v47 = vadd.f32 %v2073_v2, %v2037_v33  ;;  %v2074_v13 = vmul.f32 %v4045_v57, %v1916_v56  ;;  %vm4846_vm0 = vmmov %vm4834_vm1 }
 0x294   : > { %v2075_v32 = vmul.f32 %v4045_v57, %v1935_v17  ;;  %v1972_v54 = vmul.f32 %v4042_v35, %v1840_v38  ;;  %v2076_v55 = vmul.f32 %v4045_v57, %v1914_v27  ;;  %vm4849_vm1 = vnez %v4744_v31  ;;  %vm4852_vm12 = vmmov %vm4846_vm0 }
 0x295   : > { %v2731_v29 = vpop.f32.mrb[28].mxu1  ;;  %v4219_v2 = vadd.f32 %v2072_v30, %v2036_v23  ;;  %vm4851_vm10 = vnez %v4748_v28  ;;  %vm4853_vm5 = vmmov %vm4838_vm3 }
 0x296   : > { %v1696_v46 = vadd.f32 %v2731_v29, %v4028_v12  ;;  %v1687_v42 = vpop.f32.mrb[29].mxu1  ;;  %v4245_v30 = vadd.f32 %v2075_v32, %v2039_v21 }
 0x297   : > { %v1688_v60 = vadd.f32 %v1687_v42, %v4028_v12  ;;  %v2732_v24 = vpop.f32.mrb[30].mxu1 }
 0x298   : > { %v1780_v53 = vrot.slane %v1696_v46, 7  ;;  %v1876_v61 = vrot.slane %v1696_v46, 1  ;;  %v2012_v50 = vmul.f32 %v4035_v63, %v1696_v46  ;;  %v4211_v44 = vadd.f32 %v2732_v24, %v4028_v12  ;;  %v1690_v14 = vpop.f32.mrb[31].mxu1 }
 0x299   : > { %v1778_v33 = vrot.slane %v1688_v60, 7  ;;  %v1874_v36 = vrot.slane %v1688_v60, 1  ;;  %v2010_v52 = vmul.f32 %v4035_v63, %v1688_v60  ;;  %v1691_v26 = vadd.f32 %v1690_v14, %v4028_v12 }
 0x29a   : > { %v1781_v0 = vrot.slane %v4211_v44, 7  ;;  %v1877_v38 = vrot.slane %v4211_v44, 1  ;;  %v2013_v7 = vmul.f32 %v4035_v63, %v4211_v44 }
 0x29b   : > { %v1817_v29 = vsel %vm4841_vm9, %v1777_v22, %v1778_v33  ;;  %v1913_v56 = vsel %vm4842_vm11, %v1873_v34, %v1874_v36  ;;  %v1779_v17 = vrot.slane %v1691_v26, 7  ;;  %v1875_v27 = vrot.slane %v1691_v26, 1  ;;  %vm4855_vm11 = vmmov %vm4846_vm0 }
 0x29c   : > { %v1842_v46 = vsel %vm4843_vm6, %v1817_v29, 0.0  ;;  %v1814_v42 = vsel %vm4844_vm15, %v1780_v53, %v1781_v0  ;;  %v2011_v60 = vmul.f32 %v4035_v63, %v1691_v26  ;;  %v4243_v26 = vadd.f32 %v2074_v13, %v2038_v58  ;;  %vm4857_vm15 = vmmov %vm4846_vm0 }
 0x29d   : > { %v1974_v23 = vmul.f32 %v4042_v35, %v1842_v46  ;;  %v1977_v22 = vmul.f32 %v4042_v35, %v1814_v42  ;;  %v1815_v34 = vsel %vm4845_vm8, %v1779_v17, %v1780_v53  ;;  %v1816_v24 = vsel %vm4846_vm0, %v1778_v33, %v1779_v17  ;;  %vm4858_vm8 = vmmov %vm4846_vm0 }
 0x29e   : > { %v1844_v3 = vsel %vm4847_vm4, %v1815_v34, 0.0  ;;  %v1911_v44 = vsel %vm4848_vm13, %v1875_v27, %v1876_v61  ;;  %v1975_v14 = vmul.f32 %v4042_v35, %v1816_v24  ;;  %v1937_v53 = vsel %vm4849_vm1, %v1913_v56, 0.0  ;;  %vm4860_vm4 = vmmov %vm4838_vm3 }
 0x29f   : > { %v2042_v29 = vadd.f32 %v2010_v52, %v1974_v23  ;;  %v2045_v46 = vadd.f32 %v2013_v7, %v1977_v22  ;;  %v2040_v33 = vadd.f32 %v4140_v8, %v1972_v54  ;;  %v2077_v48 = vmul.f32 %v4045_v57, %v1937_v53  ;;  %vm4861_vm13 = vmmov %vm4838_vm3 }
 0x2a0   : > { %v2043_v42 = vadd.f32 %v2011_v60, %v1975_v14  ;;  %v1912_v17 = vsel %vm4850_vm7, %v1874_v36, %v1875_v27  ;;  %v2134_v34 = vpack.c.bf16 %v4245_v30, %v4243_v26  ;;  %v1939_v58 = vsel %vm4851_vm10, %v1911_v44, 0.0  ;;  %vm4863_vm7 = vmmov %vm4838_vm3 }
 0x2a1   : > { %v2078_v21 = vmul.f32 %v4045_v57, %v1912_v17  ;;  %v1910_v31 = vsel %vm4838_vm3, %v1876_v61, %v1877_v38  ;;  %v4260_v13 = vadd.f32 %v2076_v55, %v2040_v33  ;;  %v4263_v8 = vadd.f32 %v2077_v48, %v4174_v41  ;;  %vm4864_vm10 = vmmov %vm4858_vm8 }
 0x2a2   : > { %v2079_v32 = vmul.f32 %v4045_v57, %v1939_v58  ;;  %v1976_v54 = vmul.f32 %v4042_v35, %v1844_v3  ;;  %v2080_v3 = vmul.f32 %v4045_v57, %v1910_v31  ;;  %vm4854_vm9 = vnez %v4756_v15 }
 0x2a3   : > { %v4267_v52 = vadd.f32 %v2078_v21, %v2042_v29  ;;  %v2135_v56 = vpack.c.bf16 %v4263_v8, %v4260_v13  ;;  %vm4856_vm6 = vnez %v4752_v49  ;;  %vm4859_vm0 = vnez %v4765_v40 }
 0x2a4   : > { %v4272_v27 = vadd.f32 %v2079_v32, %v2043_v42  ;;  %v2044_v55 = vadd.f32 %v2012_v50, %v1976_v54  ;;  %vm4862_vm1 = vnez %v4758_v39 }
 0x2a6   : > { %v2735_v36 = vpop.f32.mrb[32].mxu1  ;;  %v2136_v48 = vpack.c.bf16 %v4272_v27, %v4267_v52 }
 0x2a7   : > { %v1712_v28 = vadd.f32 %v2735_v36, %v4028_v12  ;;  %v1703_v7 = vpop.f32.mrb[33].mxu1 }
 0x2a8   : > { %v1704_v61 = vadd.f32 %v1703_v7, %v4028_v12  ;;  %v2736_v41 = vpop.f32.mrb[34].mxu1 }
 0x2a9   : > { %v1784_v60 = vrot.slane %v1712_v28, 7  ;;  %v1880_v23 = vrot.slane %v1712_v28, 1  ;;  %v4276_v22 = vadd.f32 %v2736_v41, %v4028_v12  ;;  %v1706_v24 = vpop.f32.mrb[35].mxu1 }
 0x2aa   : > { %v1782_v44 = vrot.slane %v1704_v61, 7  ;;  %v1878_v14 = vrot.slane %v1704_v61, 1  ;;  %v2014_v29 = vmul.f32 %v4035_v63, %v1704_v61  ;;  %v1707_v53 = vadd.f32 %v1706_v24, %v4028_v12 }
 0x2ab   : > { %v1785_v42 = vrot.slane %v4276_v22, 7  ;;  %v1881_v50 = vrot.slane %v4276_v22, 1  ;;  %v2017_v33 = vmul.f32 %v4035_v63, %v4276_v22 }
 0x2ac   : > { %v1813_v17 = vsel %vm4852_vm12, %v1781_v0, %v1782_v44  ;;  %v1909_v58 = vsel %vm4853_vm5, %v1877_v38, %v1878_v14  ;;  %v1783_v21 = vrot.slane %v1707_v53, 7  ;;  %v1879_v31 = vrot.slane %v1707_v53, 1  ;;  %vm4866_vm5 = vmmov %vm4858_vm8 }
 0x2ad   : > { %v1846_v32 = vsel %vm4854_vm9, %v1813_v17, 0.0  ;;  %v1810_v54 = vsel %vm4855_vm11, %v1784_v60, %v1785_v42  ;;  %v2015_v36 = vmul.f32 %v4035_v63, %v1707_v53  ;;  %v1941_v7 = vsel %vm4856_vm6, %v1909_v58, 0.0  ;;  %vm4868_vm11 = vmmov %vm4866_vm5 }
 0x2ae   : > { %v1978_v61 = vmul.f32 %v4042_v35, %v1846_v32  ;;  %v1981_v0 = vmul.f32 %v4042_v35, %v1810_v54  ;;  %v1811_v38 = vsel %vm4857_vm15, %v1783_v21, %v1784_v60  ;;  %v1812_v41 = vsel %vm4858_vm8, %v1782_v44, %v1783_v21  ;;  %vm4869_vm6 = vmmov %vm4866_vm5 }
 0x2af   : > { %v1848_v15 = vsel %vm4859_vm0, %v1811_v38, 0.0  ;;  %v1907_v22 = vsel %vm4860_vm4, %v1879_v31, %v1880_v23  ;;  %v1979_v24 = vmul.f32 %v4042_v35, %v1812_v41  ;;  %v2081_v49 = vmul.f32 %v4045_v57, %v1941_v7  ;;  %vm4871_vm8 = vmmov %vm4838_vm3 }
 0x2b0   : > { %v2046_v53 = vadd.f32 %v2014_v29, %v1978_v61  ;;  %v2049_v17 = vadd.f32 %v2017_v33, %v1981_v0  ;;  %v4310_v58 = vadd.f32 %v2080_v3, %v2044_v55  ;;  %v1908_v60 = vsel %vm4861_vm13, %v1878_v14, %v1879_v31  ;;  %vm4872_vm0 = vmmov %vm4838_vm3 }
 0x2b1   : > { %v2047_v32 = vadd.f32 %v2015_v36, %v1979_v24  ;;  %v4314_v54 = vadd.f32 %v2081_v49, %v2045_v46  ;;  %v1943_v40 = vsel %vm4862_vm1, %v1907_v22, 0.0  ;;  %v2082_v44 = vmul.f32 %v4045_v57, %v1908_v60  ;;  %vm4874_vm13 = vmmov %vm4872_vm0 }
 0x2b2   : > { %v2016_v21 = vmul.f32 %v4035_v63, %v1712_v28  ;;  %v2083_v38 = vmul.f32 %v4045_v57, %v1943_v40  ;;  %v1906_v29 = vsel %vm4863_vm7, %v1880_v23, %v1881_v50  ;;  %v1980_v55 = vmul.f32 %v4042_v35, %v1848_v15  ;;  %vm4875_vm1 = vmmov %vm4866_vm5 }
 0x2b3   : > { %v4326_v46 = vadd.f32 %v2082_v44, %v2046_v53  ;;  %v2084_v15 = vmul.f32 %v4045_v57, %v1906_v29  ;;  %vm4865_vm12 = vnez %v4772_v6  ;;  %vm4867_vm9 = vnez %v4767_v11  ;;  %vm4876_vm7 = vmmov %vm4872_vm0 }
 0x2b4   : > { %v4329_v31 = vadd.f32 %v2083_v38, %v2047_v32  ;;  %v2048_v36 = vadd.f32 %v2016_v21, %v1980_v55  ;;  %vm4870_vm15 = vnez %v4780_v43  ;;  %vm4873_vm4 = vnez %v4776_v9 }
 0x2b5   : > { %v2739_v3 = vpop.f32.mrb[36].mxu1 }
 0x2b6   : > { %v1728_v39 = vadd.f32 %v2739_v3, %v4028_v12  ;;  %v1719_v33 = vpop.f32.mrb[37].mxu1  ;;  %v4367_v44 = vadd.f32 %v2084_v15, %v2048_v36  ;;  %v4910_v4 = vpack.c.bf16 %v4329_v31, %v4326_v46 }
 0x2b7   : > { %v1720_v28 = vadd.f32 %v1719_v33, %v4028_v12  ;;  %v2740_v7 = vpop.f32.mrb[38].mxu1 }
 0x2b8   : > { %v1788_v61 = vrot.slane %v1728_v39, 7  ;;  %v1884_v0 = vrot.slane %v1728_v39, 1  ;;  %v4333_v23 = vadd.f32 %v2740_v7, %v4028_v12  ;;  %v1722_v41 = vpop.f32.mrb[39].mxu1 }
 0x2b9   : > { %v1786_v22 = vrot.slane %v1720_v28, 7  ;;  %v1882_v24 = vrot.slane %v1720_v28, 1  ;;  %v2018_v49 = vmul.f32 %v4035_v63, %v1720_v28  ;;  %v1723_v53 = vadd.f32 %v1722_v41, %v4028_v12 }
 0x2ba   : > { %v1789_v60 = vrot.slane %v4333_v23, 7  ;;  %v1885_v32 = vrot.slane %v4333_v23, 1  ;;  %v2021_v40 = vmul.f32 %v4035_v63, %v4333_v23 }
 0x2bb   : > { %v1809_v21 = vsel %vm4864_vm10, %v1785_v42, %v1786_v22  ;;  %v1905_v38 = vsel %vm4838_vm3, %v1881_v50, %v1882_v24  ;;  %v1787_v29 = vrot.slane %v1723_v53, 7  ;;  %v1883_v55 = vrot.slane %v1723_v53, 1  ;;  %vm4878_vm3 = vmmov %vm4875_vm1 }
 0x2bc   : > { %v1850_v3 = vsel %vm4865_vm12, %v1809_v21, 0.0  ;;  %v1806_v33 = vsel %vm4866_vm5, %v1788_v61, %v1789_v60  ;;  %v2019_v28 = vmul.f32 %v4035_v63, %v1723_v53  ;;  %v1945_v7 = vsel %vm4867_vm9, %v1905_v38, 0.0  ;;  %vm4880_vm5 = vmmov %vm4875_vm1 }
 0x2bd   : > { %v1982_v23 = vmul.f32 %v4042_v35, %v1850_v3  ;;  %v1985_v42 = vmul.f32 %v4042_v35, %v1806_v33  ;;  %v1807_v50 = vsel %vm4868_vm11, %v1787_v29, %v1788_v61  ;;  %v1808_v41 = vsel %vm4869_vm6, %v1786_v22, %v1787_v29  ;;  %vm4881_vm9 = vmmov %vm4875_vm1 }
 0x2be   : > { %v1852_v6 = vsel %vm4870_vm15, %v1807_v50, 0.0  ;;  %v1903_v21 = vsel %vm4871_vm8, %v1883_v55, %v1884_v0  ;;  %v1983_v53 = vmul.f32 %v4042_v35, %v1808_v41  ;;  %v2085_v11 = vmul.f32 %v4045_v57, %v1945_v7  ;;  %vm4883_vm6 = vmmov %vm4872_vm0 }
 0x2bf   : > { %v2050_v38 = vadd.f32 %v2018_v49, %v1982_v23  ;;  %v2053_v3 = vadd.f32 %v2021_v40, %v1985_v42  ;;  %v1904_v61 = vsel %vm4872_vm0, %v1882_v24, %v1883_v55  ;;  %v1947_v43 = vsel %vm4873_vm4, %v1903_v21, 0.0  ;;  %vm4884_vm15 = vmmov %vm4872_vm0 }
 0x2c0   : > { %v2051_v33 = vadd.f32 %v2019_v28, %v1983_v53  ;;  %v4371_v14 = vadd.f32 %v2085_v11, %v2049_v17  ;;  %v2086_v22 = vmul.f32 %v4045_v57, %v1904_v61  ;;  %v2020_v29 = vmul.f32 %v4035_v63, %v1728_v39  ;;  %vm4886_vm4 = vmmov %vm4875_vm1 }
 0x2c1   : > { %v2087_v50 = vmul.f32 %v4045_v57, %v1947_v43  ;;  %v1902_v49 = vsel %vm4874_vm13, %v1884_v0, %v1885_v32  ;;  %v1984_v36 = vmul.f32 %v4042_v35, %v1852_v6  ;;  %vm4877_vm10 = vnez %v4789_v5  ;;  %vm4887_vm13 = vmmov %vm4872_vm0 }
 0x2c2   : > { %v2139_v15 = vpack.c.bf16 %v4371_v14, %v4367_v44  ;;  %v4383_v24 = vadd.f32 %v2086_v22, %v2050_v38  ;;  %v2088_v55 = vmul.f32 %v4045_v57, %v1902_v49  ;;  %vm4879_vm12 = vnez %v4782_v59 }
 0x2c3   : > { %v4385_v40 = vadd.f32 %v2087_v50, %v2051_v33  ;;  %v2052_v9 = vadd.f32 %v2020_v29, %v1984_v36  ;;  %vm4882_vm11 = vnez %v4796_v62  ;;  %vm4885_vm8 = vnez %v4791_v10 }
 0x2c5   : > { %v2743_v17 = vpop.f32.mrb[40].mxu1  ;;  %v2140_v0 = vpack.c.bf16 %v4385_v40, %v4383_v24  ;;  %v4392_v42 = vadd.f32 %v2088_v55, %v2052_v9 }
 0x2c6   : > { %v1744_v39 = vadd.f32 %v2743_v17, %v4028_v12  ;;  %v1735_v28 = vpop.f32.mrb[41].mxu1 }
 0x2c7   : > { %v1736_v7 = vadd.f32 %v1735_v28, %v4028_v12  ;;  %v2744_v23 = vpop.f32.mrb[42].mxu1 }
 0x2c8   : > { %v1792_v41 = vrot.slane %v1744_v39, 7  ;;  %v4395_v6 = vadd.f32 %v2744_v23, %v4028_v12  ;;  %v1738_v21 = vpop.f32.mrb[43].mxu1  ;;  %v1888_v53 = vrot.slane %v1744_v39, 1 }
 0x2c9   : > { %v1790_v11 = vrot.slane %v1736_v7, 7  ;;  %v1886_v38 = vrot.slane %v1736_v7, 1  ;;  %v1739_v61 = vadd.f32 %v1738_v21, %v4028_v12  ;;  %v2022_v33 = vmul.f32 %v4035_v63, %v1736_v7 }
 0x2ca   : > { %v1793_v43 = vrot.slane %v4395_v6, 7  ;;  %v1889_v22 = vrot.slane %v4395_v6, 1  ;;  %v2025_v29 = vmul.f32 %v4035_v63, %v4395_v6 }
 0x2cb   : > { %v1805_v50 = vsel %vm4875_vm1, %v1789_v60, %v1790_v11  ;;  %v1901_v49 = vsel %vm4876_vm7, %v1885_v32, %v1886_v38  ;;  %v1791_v36 = vrot.slane %v1739_v61, 7  ;;  %v1887_v17 = vrot.slane %v1739_v61, 1  ;;  %vm4889_vm7 = vmmov %vm4878_vm3 }
 0x2cc   : > { %v1854_v9 = vsel %vm4877_vm10, %v1805_v50, 0.0  ;;  %v1802_v55 = vsel %vm4878_vm3, %v1792_v41, %v1793_v43  ;;  %v2023_v28 = vmul.f32 %v4035_v63, %v1739_v61  ;;  %v1949_v7 = vsel %vm4879_vm12, %v1901_v49, 0.0  ;;  %vm4891_vm10 = vmmov %vm4878_vm3 }
 0x2cd   : > { %v1986_v23 = vmul.f32 %v4042_v35, %v1854_v9  ;;  %v1989_v60 = vmul.f32 %v4042_v35, %v1802_v55  ;;  %v1803_v32 = vsel %vm4880_vm5, %v1791_v36, %v1792_v41  ;;  %v1804_v6 = vsel %vm4881_vm9, %v1790_v11, %v1791_v36  ;;  %vm4893_vm3 = vmmov %vm4872_vm0 }
 0x2ce   : > { %v1856_v5 = vsel %vm4882_vm11, %v1803_v32, 0.0  ;;  %v1899_v21 = vsel %vm4883_vm6, %v1887_v17, %v1888_v53  ;;  %v1987_v61 = vmul.f32 %v4042_v35, %v1804_v6  ;;  %v2089_v59 = vmul.f32 %v4045_v57, %v1949_v7  ;;  %vm4895_vm5 = vmmov %vm4886_vm4 }
 0x2cf   : > { %v2054_v50 = vadd.f32 %v2022_v33, %v1986_v23  ;;  %v4426_v49 = vadd.f32 %v2025_v29, %v1989_v60  ;;  %v1900_v9 = vsel %vm4884_vm15, %v1886_v38, %v1887_v17  ;;  %v1951_v41 = vsel %vm4885_vm8, %v1899_v21, 0.0  ;;  %vm4896_vm9 = vmmov %vm4886_vm4 }
 0x2d0   : > { %v2055_v11 = vadd.f32 %v2023_v28, %v1987_v61  ;;  %v4432_v36 = vadd.f32 %v2089_v59, %v2053_v3  ;;  %v2090_v62 = vmul.f32 %v4045_v57, %v1900_v9  ;;  %v2091_v55 = vmul.f32 %v4045_v57, %v1951_v41  ;;  %vm4897_vm11 = vmmov %vm4872_vm0 }
 0x2d1   : > { %v2024_v32 = vmul.f32 %v4035_v63, %v1744_v39  ;;  %v1898_v33 = vsel %vm4872_vm0, %v1888_v53, %v1889_v22  ;;  %v1988_v29 = vmul.f32 %v4042_v35, %v1856_v5  ;;  %v1998_v39 = vmul.f32 %v4035_v63, %v4038_v37  ;;  %vm4899_vm15 = vmmov %vm4872_vm0 }
 0x2d2   : > { %v4442_v10 = vadd.f32 %v2090_v62, %v2054_v50  ;;  %v4444_v17 = vadd.f32 %v2091_v55, %v2055_v11  ;;  %v2066_v6 = vmul.f32 %v4045_v57, %v4080_v20  ;;  %v2092_v9 = vmul.f32 %v4045_v57, %v1898_v33 }
 0x2d3   : > { %v2747_v7 = vpop.f32.mrb[44].mxu1  ;;  %v2056_v23 = vadd.f32 %v2024_v32, %v1988_v29  ;;  %vm4888_vm1 = vnez %v4801_v18  ;;  %vm4894_vm12 = vnez %v4722_v16  ;;  %vm4898_vm6 = vnez %v4798_v51 }
 0x2d4   : > { %v1760_v3 = vadd.f32 %v2747_v7, %v4028_v12  ;;  %v1751_v28 = vpop.f32.mrb[45].mxu1  ;;  %v4911_v25 = vpack.c.bf16 %v4432_v36, %v4392_v42 }
 0x2d5   : > { %v1752_v60 = vadd.f32 %v1751_v28, %v4028_v12  ;;  %v2748_v53 = vpop.f32.mrb[46].mxu1  ;;  %v2124_v7 = vadd.f32 %v2092_v9, %v2056_v23  ;;  %v4892_v23 = vrot.slane %v4038_v37, 1 }
 0x2d6   : > { %v1796_v21 = vrot.slane %v1760_v3, 7  ;;  %v1892_v61 = vrot.slane %v1760_v3, 1  ;;  %v1763_v59 = vadd.f32 %v2748_v53, %v4028_v12  ;;  %v1754_v50 = vpop.f32.mrb[47].mxu1 }
 0x2d7   : > { %v1794_v41 = vrot.slane %v1752_v60, 7  ;;  %v1890_v11 = vrot.slane %v1752_v60, 1  ;;  %v2026_v62 = vmul.f32 %v4035_v63, %v1752_v60  ;;  %v1755_v55 = vadd.f32 %v1754_v50, %v4028_v12 }
 0x2d8   : > { %v1797_v32 = vrot.slane %v1763_v59, 7  ;;  %v1893_v29 = vrot.slane %v1763_v59, 1  ;;  %v2029_v20 = vmul.f32 %v4035_v63, %v1763_v59  ;;  %v4890_v12 = vrot.slane %v4038_v37, 7 }
 0x2d9   : > { %v1801_v28 = vsel %vm4886_vm4, %v1793_v43, %v1794_v41  ;;  %v1897_v53 = vsel %vm4887_vm13, %v1889_v22, %v1890_v11  ;;  %v1795_v5 = vrot.slane %v1755_v55, 7  ;;  %v1891_v38 = vrot.slane %v1755_v55, 1 }
 0x2da   : > { %v1858_v33 = vsel %vm4888_vm1, %v1801_v28, 0.0  ;;  %v1798_v60 = vsel %vm4889_vm7, %v1796_v21, %v1797_v32  ;;  %v1829_v59 = vsel %vm4891_vm10, %v1797_v32, %v4890_v12  ;;  %v1925_v43 = vsel %vm4893_vm3, %v1893_v29, %v4892_v23 }
 0x2db   : > { %v1990_v22 = vmul.f32 %v4042_v35, %v1858_v33  ;;  %v1830_v50 = vsel %vm4894_vm12, %v1829_v59, 0.0  ;;  %v1993_v18 = vmul.f32 %v4042_v35, %v1798_v60  ;;  %v1799_v9 = vsel %vm4895_vm5, %v1795_v5, %v1796_v21 }
 0x2dc   : > { %v1800_v28 = vsel %vm4896_vm9, %v1794_v41, %v1795_v5  ;;  %v1860_v32 = vsel %vm3965_vm2, %v1799_v9, 0.0  ;;  %v1895_v37 = vsel %vm4897_vm11, %v1891_v38, %v1892_v61  ;;  %v2027_v12 = vmul.f32 %v4035_v63, %v1755_v55  ;;  %v4900_v41 = vld [vmem:[#allocation16_spill] sm:$0xff]  ;;  %vm4902_vm2 = vmmov %vm4872_vm0 }
 0x2dd   : > { %v2058_v33 = vadd.f32 %v2026_v62, %v1990_v22  ;;  %v2061_v23 = vadd.f32 %v2029_v20, %v1993_v18  ;;  %v1991_v16 = vmul.f32 %v4042_v35, %v1800_v28  ;;  %v1962_v60 = vmul.f32 %v4042_v35, %v1830_v50 }
 0x2de   : > { %v1953_v21 = vsel %vm4898_vm6, %v1897_v53, 0.0  ;;  %v1896_v5 = vsel %vm4899_vm15, %v1890_v11, %v1891_v38  ;;  %vm4901_vm8 = vnez %v4900_v41  ;;  %v1894_v59 = vsel %vm4902_vm2, %v1892_v61, %v1893_v29 }
 0x2df   : > { %v1955_v19 = vsel %vm4901_vm8, %v1895_v37, 0.0  ;;  %v2059_v9 = vadd.f32 %v2027_v12, %v1991_v16  ;;  %v2030_v55 = vadd.f32 %v1998_v39, %v1962_v60  ;;  %v2093_v62 = vmul.f32 %v4045_v57, %v1953_v21  ;;  %v4904_v12 = vld [vmem:[#allocation20_spill] sm:$0xff] }
 0x2e0   : > { %v2094_v20 = vmul.f32 %v4045_v57, %v1896_v5  ;;  %v2028_v22 = vmul.f32 %v4035_v63, %v1760_v3  ;;  %v2095_v51 = vmul.f32 %v4045_v57, %v1955_v19  ;;  %v1957_v50 = vsel %vm3969_vm14, %v1925_v43, 0.0  ;;  %v4905_v43 = vld [vmem:[#allocation21_spill] sm:$0xff]  ;;  %v4906_v5 = vld [vmem:[#allocation19_spill] sm:$0xff] }
 0x2e1   : > { %v1992_v38 = vmul.f32 %v4042_v35, %v1860_v32  ;;  %v2098_v11 = vadd.f32 %v2066_v6, %v2030_v55  ;;  %v2125_v18 = vadd.f32 %v2093_v62, %v4426_v49  ;;  %v2097_v61 = vmul.f32 %v4045_v57, %v1957_v50 }
 0x2e2   : > { %v2126_v28 = vadd.f32 %v2094_v20, %v2058_v33  ;;  %v2127_v39 = vadd.f32 %v2095_v51, %v2059_v9  ;;  %v2096_v37 = vmul.f32 %v4045_v57, %v1894_v59  ;;  %v4907_v35 = vpack.c.bf16 %v4905_v43, %v4906_v5 }
 0x2e3   : > { %v2060_v29 = vadd.f32 %v2028_v22, %v1992_v38  ;;  %v2130_v16 = vpack.c.bf16 %v4904_v12, %v2098_v11  ;;  %v2143_v63 = vpack.c.bf16 %v2125_v18, %v2124_v7  ;;  %v2129_v3 = vadd.f32 %v2097_v61, %v2061_v23 }
 0x2e4   : > { %v2144_v60 = vpack.c.bf16 %v2127_v39, %v2126_v28  ;;  %v4908_v49 = vpack.c.bf16 %v4202_v47, %v4219_v2  ;;  %v4909_v57 = vpack.c.bf16 %v4314_v54, %v4310_v58  ;;  %v2164_v47 = vsub.s32 7, %v3430_v1  ;;  %v4913_v2 = vld [vmem:[#allocation18_spill] sm:$0xff] }
 0x2e5   : > { %v2128_v21 = vadd.f32 %v2096_v37, %v2060_v29  ;;  %2765 = vmatprep.mubr.bf16.mxu0 %v2130_v16 }
 0x2e6   : > { %2766 = vmatmul.mubr.bf16.vlgmr.msra.gmra.mrb[16].mxu0 %v4907_v35  ;;  %v4547_v30 = vrot.slane %v4913_v2, %v2164_v47 }
 0x2e7   : > { %v2145_v6 = vpack.c.bf16 %v2129_v3, %v2128_v21  ;;  %2769 = vmatprep.mubr.bf16.mxu0 %v2132_v45  ;;  %v4912_v45 = vpack.c.bf16 %v4444_v17, %v4442_v10 }
 0x2ee   : > { %2770 = vmatmul.mubr.bf16.gmra.mrb[20].mxu0 %v4908_v49 }
 0x2ef   : > { %2773 = vmatprep.mubr.bf16.mxu0 %v2134_v34 }
 0x2f6   : > { %2774 = vmatmul.mubr.bf16.gmra.mrb[24].mxu0 %v2135_v56 }
 0x2f7   : > { %2777 = vmatprep.mubr.bf16.mxu0 %v2136_v48 }
 0x2fe   : > { %2778 = vmatmul.mubr.bf16.gmra.mrb[28].mxu0 %v4909_v57 }
 0x2ff   : > { %2781 = vmatprep.mubr.bf16.mxu0 %v4910_v4 }
 0x306   : > { %2782 = vmatmul.mubr.bf16.gmra.mrb[32].mxu0 %v2139_v15 }
 0x307   : > { %2785 = vmatprep.mubr.bf16.mxu0 %v2140_v0 }
 0x30e   : > { %2786 = vmatmul.mubr.bf16.gmra.mrb[36].mxu0 %v4911_v25 }
 0x30f   : > { %2789 = vmatprep.mubr.bf16.mxu0 %v4912_v45 }
 0x316   : > { %2790 = vmatmul.mubr.bf16.gmra.mrb[40].mxu0 %v2143_v63 }
 0x317   : > { %2793 = vmatprep.mubr.bf16.mxu0 %v2144_v60 }
 0x31e   : > { %2794 = vmatmul.mubr.bf16.gmra.mrb[44].mxu0 %v2145_v6 }
 0x3b9   : > { %v2767_v26 = vpop.f32.mrb[16].mxu0 }
 0x3ba   : > { %v2257_v34 = vadd.f32 %v2767_v26, %v4547_v30  ;;  %v2248_v13 = vpop.f32.mrb[17].mxu0 }
 0x3bb   : > { %v2249_v8 = vadd.f32 %v2248_v13, %v4547_v30  ;;  %v2768_v52 = vpop.f32.mrb[18].mxu0 }
 0x3bc   : > { %2377 = vst [vmem:[%s4553_s17 + $0x10] sm:$0xff] %v2257_v34  ;;  %v2260_v1 = vadd.f32 %v2768_v52, %v4547_v30  ;;  %v2251_v56 = vpop.f32.mrb[19].mxu0 }
 0x3bd   : > { %2375 = vst [vmem:[%s4553_s17] sm:$0xff] %v2249_v8  ;;  %v2252_v27 = vadd.f32 %v2251_v56, %v4547_v30 }
 0x3be   : > { %2378 = vst [vmem:[%s4553_s17 + $0x18] sm:$0xff] %v2260_v1 }
 0x3bf   : > { %2376 = vst [vmem:[%s4553_s17 + $0x8] sm:$0xff] %v2252_v27 }
 0x3c1   : > { %v2771_v48 = vpop.f32.mrb[20].mxu0 }
 0x3c2   : > { %v2273_v58 = vadd.f32 %v2771_v48, %v4547_v30  ;;  %v2264_v54 = vpop.f32.mrb[21].mxu0 }
 0x3c3   : > { %v2265_v14 = vadd.f32 %v2264_v54, %v4547_v30  ;;  %v2772_v46 = vpop.f32.mrb[22].mxu0 }
 0x3c4   : > { %2381 = vst [vmem:[%s4553_s17 + $0x30] sm:$0xff] %v2273_v58  ;;  %v2276_v31 = vadd.f32 %v2772_v46, %v4547_v30  ;;  %v2267_v44 = vpop.f32.mrb[23].mxu0 }
 0x3c5   : > { %2379 = vst [vmem:[%s4553_s17 + $0x20] sm:$0xff] %v2265_v14  ;;  %v2268_v15 = vadd.f32 %v2267_v44, %v4547_v30 }
 0x3c6   : > { %2382 = vst [vmem:[%s4553_s17 + $0x38] sm:$0xff] %v2276_v31 }
 0x3c7   : > { %2380 = vst [vmem:[%s4553_s17 + $0x28] sm:$0xff] %v2268_v15 }
 0x3c9   : > { %v2775_v24 = vpop.f32.mrb[24].mxu0 }
 0x3ca   : > { %v2289_v40 = vadd.f32 %v2775_v24, %v4547_v30  ;;  %v2280_v0 = vpop.f32.mrb[25].mxu0 }
 0x3cb   : > { %v2281_v42 = vadd.f32 %v2280_v0, %v4547_v30  ;;  %v2776_v36 = vpop.f32.mrb[26].mxu0 }
 0x3cc   : > { %2385 = vst [vmem:[%s4553_s17 + $0x50] sm:$0xff] %v2289_v40  ;;  %v2292_v10 = vadd.f32 %v2776_v36, %v4547_v30  ;;  %v2283_v17 = vpop.f32.mrb[27].mxu0 }
 0x3cd   : > { %2383 = vst [vmem:[%s4553_s17 + $0x40] sm:$0xff] %v2281_v42  ;;  %v2284_v7 = vadd.f32 %v2283_v17, %v4547_v30 }
 0x3ce   : > { %2386 = vst [vmem:[%s4553_s17 + $0x58] sm:$0xff] %v2292_v10 }
 0x3cf   : > { %2384 = vst [vmem:[%s4553_s17 + $0x48] sm:$0xff] %v2284_v7 }
 0x3d1   : > { %v2779_v32 = vpop.f32.mrb[28].mxu0 }
 0x3d2   : > { %v2305_v33 = vadd.f32 %v2779_v32, %v4547_v30  ;;  %v2296_v23 = vpop.f32.mrb[29].mxu0 }
 0x3d3   : > { %v2297_v41 = vadd.f32 %v2296_v23, %v4547_v30  ;;  %v2780_v19 = vpop.f32.mrb[30].mxu0 }
 0x3d4   : > { %2389 = vst [vmem:[%s4553_s17 + $0x70] sm:$0xff] %v2305_v33  ;;  %v2308_v59 = vadd.f32 %v2780_v19, %v4547_v30  ;;  %v2299_v9 = vpop.f32.mrb[31].mxu0 }
 0x3d5   : > { %2387 = vst [vmem:[%s4553_s17 + $0x60] sm:$0xff] %v2297_v41  ;;  %v2300_v55 = vadd.f32 %v2299_v9, %v4547_v30 }
 0x3d6   : > { %2390 = vst [vmem:[%s4553_s17 + $0x78] sm:$0xff] %v2308_v59 }
 0x3d7   : > { %2388 = vst [vmem:[%s4553_s17 + $0x68] sm:$0xff] %v2300_v55 }
 0x3d9   : > { %v2783_v62 = vpop.f32.mrb[32].mxu0 }
 0x3da   : > { %v2321_v20 = vadd.f32 %v2783_v62, %v4547_v30  ;;  %v2312_v22 = vpop.f32.mrb[33].mxu0 }
 0x3db   : > { %v2313_v51 = vadd.f32 %v2312_v22, %v4547_v30  ;;  %v2784_v53 = vpop.f32.mrb[34].mxu0 }
 0x3dc   : > { %2393 = vst [vmem:[%s4553_s17 + $0x90] sm:$0xff] %v2321_v20  ;;  %v2324_v50 = vadd.f32 %v2784_v53, %v4547_v30  ;;  %v2315_v38 = vpop.f32.mrb[35].mxu0 }
 0x3dd   : > { %2391 = vst [vmem:[%s4553_s17 + $0x80] sm:$0xff] %v2313_v51  ;;  %v2316_v11 = vadd.f32 %v2315_v38, %v4547_v30 }
 0x3de   : > { %2394 = vst [vmem:[%s4553_s17 + $0x98] sm:$0xff] %v2324_v50 }
 0x3df   : > { %2392 = vst [vmem:[%s4553_s17 + $0x88] sm:$0xff] %v2316_v11 }
 0x3e1   : > { %v2787_v18 = vpop.f32.mrb[36].mxu0 }
 0x3e2   : > { %v2337_v28 = vadd.f32 %v2787_v18, %v4547_v30  ;;  %v2328_v61 = vpop.f32.mrb[37].mxu0 }
 0x3e3   : > { %v2329_v39 = vadd.f32 %v2328_v61, %v4547_v30  ;;  %v2788_v29 = vpop.f32.mrb[38].mxu0 }
 0x3e4   : > { %2397 = vst [vmem:[%s4553_s17 + $0xb0] sm:$0xff] %v2337_v28  ;;  %v2340_v37 = vadd.f32 %v2788_v29, %v4547_v30  ;;  %v2331_v12 = vpop.f32.mrb[39].mxu0 }
 0x3e5   : > { %2395 = vst [vmem:[%s4553_s17 + $0xa0] sm:$0xff] %v2329_v39  ;;  %v2332_v16 = vadd.f32 %v2331_v12, %v4547_v30 }
 0x3e6   : > { %2398 = vst [vmem:[%s4553_s17 + $0xb8] sm:$0xff] %v2340_v37 }
 0x3e7   : > { %2396 = vst [vmem:[%s4553_s17 + $0xa8] sm:$0xff] %v2332_v16 }
 0x3e9   : > { %v2791_v63 = vpop.f32.mrb[40].mxu0 }
 0x3ea   : > { %v2353_v3 = vadd.f32 %v2791_v63, %v4547_v30  ;;  %v2344_v60 = vpop.f32.mrb[41].mxu0 }
 0x3eb   : > { %v2345_v21 = vadd.f32 %v2344_v60, %v4547_v30  ;;  %v2792_v43 = vpop.f32.mrb[42].mxu0 }
 0x3ec   : > { %2401 = vst [vmem:[%s4553_s17 + $0xd0] sm:$0xff] %v2353_v3  ;;  %v2356_v5 = vadd.f32 %v2792_v43, %v4547_v30  ;;  %v2347_v35 = vpop.f32.mrb[43].mxu0 }
 0x3ed   : > { %2399 = vst [vmem:[%s4553_s17 + $0xc0] sm:$0xff] %v2345_v21  ;;  %v2348_v6 = vadd.f32 %v2347_v35, %v4547_v30 }
 0x3ee   : > { %2402 = vst [vmem:[%s4553_s17 + $0xd8] sm:$0xff] %v2356_v5 }
 0x3ef   : > { %2400 = vst [vmem:[%s4553_s17 + $0xc8] sm:$0xff] %v2348_v6 }
 0x3f1   : > { %v2795_v49 = vpop.f32.mrb[44].mxu0 }
 0x3f2   : > { %v2369_v57 = vadd.f32 %v2795_v49, %v4547_v30  ;;  %v2360_v4 = vpop.f32.mrb[45].mxu0 }
 0x3f3   : > { %v2361_v25 = vadd.f32 %v2360_v4, %v4547_v30  ;;  %v2796_v45 = vpop.f32.mrb[46].mxu0 }
 0x3f4   : > { %2405 = vst [vmem:[%s4553_s17 + $0xf0] sm:$0xff] %v2369_v57  ;;  %v2372_v47 = vadd.f32 %v2796_v45, %v4547_v30  ;;  %v2363_v2 = vpop.f32.mrb[47].mxu0 }
 0x3f5   : > { %2403 = vst [vmem:[%s4553_s17 + $0xe0] sm:$0xff] %v2361_v25  ;;  %v2364_v26 = vadd.f32 %v2363_v2, %v4547_v30 }
 0x3f6   : > { %2406 = vst [vmem:[%s4553_s17 + $0xf8] sm:$0xff] %v2372_v47 }
 0x3f7   : > { %2404 = vst [vmem:[%s4553_s17 + $0xe8] sm:$0xff] %v2364_v26 }
 0x3f8   : > { %3087 = shalt.err (!%p3084_p13)
}
 0x3f9   : > { %s3088_s26 = scalar_lea.hbm %s4618_s19, 4096  ;;  %s3092_s29 = scalar_lea.hbm %s4674_s6, 8192 }
 0x3fa   : > { %p3089_p0 = scmp.ne.s32.totalorder %s4618_s19, %s3088_s26  ;;  %p3093_p9 = scmp.lt.u32.totalorder %s4618_s19, %s4674_s6 }
 0x3fb   : > { %p3094_p12 = scmp.lt.u32.totalorder %s3092_s29, %s3088_s26  ;;  %p3096_p4 = scmp.lt.u32.totalorder %s3088_s26, %s4618_s19 }
 0x3fc   : > { %p3090_p5 = pnand %p3089_p0, %p3358_p1 }
 0x3fd   : > { %p3095_p2 = por %p3094_p12, %p3093_p9 }
 0x3fe   : > { %p3091_p11 = pneg %p3090_p5 }
 0x3ff   : > { %p3097_p6 = por %p3096_p4, %p3095_p2 }
 0x401   : > { %p3098_p8 = pnand %p3097_p6, %p3091_p11 }
 0x403   : > { %3101 = shalt.err (!%p3098_p8)
}
 0x404   : > { %s3160_s10 = smov 128   ;;  %s3161_s11 = smov 8  }
 0x405   : > { %2831 = dma.vmem_to_hbm [thread:$0]  (%p3358_p1), %s4620_s12, 4096, %s4618_s19, %s2408_s25, %s3160_s10, %s3160_s10, %s3161_s11  }
 0x406 PF: > { %s2436_s8 = sand.u32 1, %s3136_s21   ;;  %p4914_p3 = scmp.ne.s32.totalorder %s4708_s28, 0 }
 0x407   : > { %p4915_p7 = scmp.ge.s32.totalorder %s3148_s24, 2  ;;  %s2437_s30 = scalar_lea.sflag [#allocation4], %s2436_s8 }
 0x409   : > { %p2851_p10 = pnand %p4915_p7, %p4914_p3 }
 0x40b   : > { %3131 = dma.done.wait (!%p2851_p10), %s2437_s30, 4096  }
 0x40c   : > { %3133 = vsyncadd (!%p2851_p10), %s2437_s30, 4294963200  ;;  %p21_p13 = scmp.ge.s32.totalorder %s3348_s18, 4   ;;  %s4916_s21 = smov %s3140_s22 }
 0x40d   : > { %s4917_s22 = smov %s3144_s23  ;;  %s4918_s23 = smov %s3364_s14 }
 0x40e   : > { %s4919_s24 = smov %s3348_s18  ;;  %23 = sbr.rel (!%p21_p13) target bundleno = 7 (0x7), region = 105 }
 0x415   :  { %2442 = vsyncpa [#allocation3], 1 }
 0x416   :  { %2444 = vsyncpa [#allocation3 + $0x1], 1 }
 0x417   :  { %2445 = vsyncpa [#allocation6], 1 }
 0x418   :  { %2446 = vsyncpa [#allocation9], 1 }
 0x419   :  { %2447 = vsyncpa [#allocation4], 1 }
 0x41a   :  { %2449 = vsyncpa [#allocation4 + $0x1], 1 }

</bundles_post_ra>
